<compile_context>
chip_gen: v5e
topology: v5e:2x2
jax: 0.10.0
libtpu: 0.0.40
codegen_flags: <defaults>
</compile_context>

<pallas_src>
import functools

import jax
import jax.numpy as jnp
from jax.experimental import pallas as pl
from jax.experimental.pallas import tpu as pltpu


def _projection_kernel(x_ref, w14_ref, b14_ref, w2_ref, b2_ref, w3_ref, b3_ref,
                       o_ref, pad_ref, *, Ho, Wo, D1, D2):
    # x_ref:     (1, M, Cp)        M = Ho*Wo, spatially pre-subsampled, channel-padded
    # w14_ref:   (Cp, D1+D2)       fused [conv1*bn1_scale | conv4*bn4_scale]
    # b14_ref:   (1, D1+D2)        fused [bn1_bias | bn4_bias]        (f32)
    # w2_ref:    (9*D1, D1)        3x3 conv weight * bn2_scale, rows ordered (ky, kx, cin)
    # b2_ref:    (1, D1)           bn2 bias                            (f32)
    # w3_ref:    (D1, D2)          conv3 * bn3_scale
    # b3_ref:    (1, D2)           bn3 bias                            (f32)
    # o_ref:     (1, M, D2)        lane-dense output (D2 multiple of 128)
    # pad_ref:   (Ho+2, Wo+16, D1) f32 scratch, interior at [1:Ho+1, 8:8+Wo]
    M = Ho * Wo
    cdt = x_ref.dtype  # compute dtype fed to the MXU (bf16 or f32)

    # ---- fused conv1 + conv4 shortcut: a single matmul over x ----
    x = x_ref[0]                                              # (M, Cp)
    t = jnp.dot(x, w14_ref[...], preferred_element_type=jnp.float32) + b14_ref[...]
    h1 = jnp.maximum(t[:, :D1], 0.0)                          # conv1+bn1+relu (M, D1) f32
    res = t[:, D1:]                                           # conv4+bn4      (M, D2) f32

    # ---- conv2 (3x3, padding=1) accumulated directly from the padded buffer ----
    # Zero only the halo (2 full rows + 2 aligned 8-wide column slabs), every step:
    # cheap, and independent of program_id so it is safe under megacore partitioning.
    pad_ref[0] = jnp.zeros((Wo + 16, D1), jnp.float32)
    pad_ref[Ho + 1] = jnp.zeros((Wo + 16, D1), jnp.float32)
    pad_ref[1:Ho + 1, 0:8, :] = jnp.zeros((Ho, 8, D1), jnp.float32)
    pad_ref[1:Ho + 1, 8 + Wo:Wo + 16, :] = jnp.zeros((Ho, 8, D1), jnp.float32)
    # Interior write is sublane-aligned (column offset 8).
    pad_ref[1:Ho + 1, 8:8 + Wo, :] = h1.reshape(Ho, Wo, D1)

    # 9 accumulated matmuls (K = D1 each) — no im2col scratch, no extra vst/vld pass.
    acc = None
    for ky in range(3):
        for kx in range(3):
            p = ky * 3 + kx
            win = pad_ref[ky:ky + Ho, 7 + kx:7 + kx + Wo, :].reshape(M, D1)
            d = jnp.dot(win.astype(cdt), w2_ref[p * D1:(p + 1) * D1, :],
                        preferred_element_type=jnp.float32)
            acc = d if acc is None else acc + d
    h2 = jnp.maximum(acc + b2_ref[...], 0.0)                  # (M, D1) f32

    # ---- conv3 + bn3, residual add, final relu ----
    out = jnp.maximum(
        jnp.dot(h2.astype(cdt), w3_ref[...],
                preferred_element_type=jnp.float32) + b3_ref[...] + res, 0.0)
    o_ref[0] = out.astype(o_ref.dtype)                        # lane-dense store


def _round_up(v, m):
    return (v + m - 1) // m * m


def _pad_to(a, shape):
    return jnp.pad(a, [(0, t - s) for s, t in zip(a.shape, shape)])


def projection_block_pallas(x_nhwc, params, *, stride=1,
                            compute_dtype=jnp.bfloat16, out_dtype=jnp.float32):
    """x_nhwc: (N, H, W, Cin) float32. Returns (N, H//stride, W//stride, d2) out_dtype."""
    w1, w2, w3, w4, s1, b1, s2, b2, s3, b3, s4, b4 = params
    Cin, d1 = w1.shape
    d2 = w3.shape[1]

    # Fold BatchNorm scales into the conv weights (one-time, outside the kernel).
    w1s = w1 * s1                        # (Cin, d1)
    w2s = w2 * s2.reshape(1, 1, 1, d1)   # (3, 3, d1, d1)  HWIO
    w3s = w3 * s3                        # (d1, d2)
    w4s = w4 * s4                        # (Cin, d2)

    # Pad channel dims to multiples of the 128-lane vreg width (lane-dense layout).
    Cp = _round_up(Cin, 128)
    D1 = _round_up(d1, 128)
    D2 = _round_up(d2, 128)

    # Fused conv1 | conv4 weight and bias.
    w14 = jnp.concatenate([_pad_to(w1s, (Cp, D1)), _pad_to(w4s, (Cp, D2))], axis=1)
    b14 = jnp.concatenate([_pad_to(b1, (1, D1)), _pad_to(b4, (1, D2))], axis=1)
    # 3x3 conv weight with rows ordered (ky, kx, cin).
    w2f = _pad_to(w2s, (3, 3, D1, D1)).reshape(9 * D1, D1)
    b2p = _pad_to(b2, (1, D1))
    w3p = _pad_to(w3s, (D1, D2))
    b3p = _pad_to(b3, (1, D2))

    # Stride of the 1x1 convs == spatial subsample of the input. allow_input_fusion lets
    # XLA fuse this slice/pad/cast chain into the kernel's input fetch (no extra HBM pass).
    # TODO(synk): alternatively fold into the kernel with a strided pl.ds read of the raw x.
    xs = x_nhwc[:, ::stride, ::stride, :]
    N, Ho, Wo, _ = xs.shape
    M = Ho * Wo
    x2 = _pad_to(xs, (N, Ho, Wo, Cp)).reshape(N, M, Cp).astype(compute_dtype)

    w14 = w14.astype(compute_dtype)
    w2f = w2f.astype(compute_dtype)
    w3p = w3p.astype(compute_dtype)

    # Explicit VMEM budget: tiles (double-buffered) + weights + pad scratch + live
    # intermediates, with ~30% headroom, clamped to a range valid on v5e/v6e/v7x.
    csize = jnp.dtype(compute_dtype).itemsize
    osize = jnp.dtype(out_dtype).itemsize
    est = (2 * M * Cp * csize                                        # x tile (x2 buffers)
           + 2 * M * D2 * osize                                      # out tile (x2)
           + 2 * (Cp * (D1 + D2) + 9 * D1 * D1 + D1 * D2) * csize    # weights (x2)
           + 2 * 2 * (D1 + D2) * 4                                   # biases (x2)
           + (Ho + 2) * (Wo + 16) * D1 * 4                           # pad scratch
           + M * (D1 + D2) * 4                                       # t (conv1|conv4)
           + 3 * M * D1 * 4                                          # h1 / acc / h2
           + M * D1 * csize                                          # per-tap cast window
           + M * D2 * 4)                                             # residual / final add
    vmem_limit = int(min(64 * 1024 * 1024, max(32 * 1024 * 1024, est * 1.3)))

    def full_spec(a):
        nd = a.ndim
        return pl.BlockSpec(a.shape, lambda n, _nd=nd: (0,) * _nd)

    kernel = functools.partial(_projection_kernel, Ho=Ho, Wo=Wo, D1=D1, D2=D2)

    out = pl.pallas_call(
        kernel,
        out_shape=jax.ShapeDtypeStruct((N, M, D2), out_dtype),
        grid=(N,),
        in_specs=[pl.BlockSpec((1, M, Cp), lambda n: (n, 0, 0)),
                  full_spec(w14), full_spec(b14), full_spec(w2f), full_spec(b2p),
                  full_spec(w3p), full_spec(b3p)],
        out_specs=pl.BlockSpec((1, M, D2), lambda n: (n, 0, 0)),
        scratch_shapes=[pltpu.VMEM((Ho + 2, Wo + 16, D1), jnp.float32)],
        compiler_params=pltpu.CompilerParams(
            dimension_semantics=("parallel",),
            vmem_limit_bytes=vmem_limit,
            allow_input_fusion=[True, False, False, False, False, False, False]),
    )(x2, w14, b14, w2f, b2p, w3p, b3p)

    out = out.reshape(N, Ho, Wo, D2)
    if D2 == d2:
        return out            # fast path: output already lane-dense at the true width
    return out[..., :d2]


# ----------------------------- parameter setup ------------------------------
def fold_bn(gamma, beta, mean, var, eps=1e-5):
    scale = gamma / jnp.sqrt(var + eps)
    bias = beta - mean * scale
    return scale.reshape(1, -1), bias.reshape(1, -1)


def make_params(key, in_channels, d1, d2):
    ks = jax.random.split(key, 20)
    w1 = jax.random.normal(ks[0], (in_channels, d1), jnp.float32) * 0.2   # 1x1
    w2 = jax.random.normal(ks[1], (3, 3, d1, d1), jnp.float32) * 0.1      # 3x3 HWIO
    w3 = jax.random.normal(ks[2], (d1, d2), jnp.float32) * 0.2            # 1x1
    w4 = jax.random.normal(ks[3], (in_channels, d2), jnp.float32) * 0.2   # 1x1 shortcut

    def bn(k, c):
        k1, k2, k3, k4 = jax.random.split(k, 4)
        gamma = jax.random.uniform(k1, (c,), jnp.float32, 0.5, 1.5)
        beta = jax.random.normal(k2, (c,), jnp.float32) * 0.1
        mean = jax.random.normal(k3, (c,), jnp.float32) * 0.1
        var = jax.random.uniform(k4, (c,), jnp.float32, 0.5, 1.5)
        return fold_bn(gamma, beta, mean, var)

    s1, b1 = bn(ks[4], d1)
    s2, b2 = bn(ks[5], d1)
    s3, b3 = bn(ks[6], d2)
    s4, b4 = bn(ks[7], d2)
    return (w1, w2, w3, w4, s1, b1, s2, b2, s3, b3, s4, b4)


# ------------------------------- JAX reference -------------------------------
def projection_block_ref(x_nhwc, params, *, stride=1):
    w1, w2, w3, w4, s1, b1, s2, b2, s3, b3, s4, b4 = params
    dn = ('NHWC', 'HWIO', 'NHWC')
    conv = functools.partial(jax.lax.conv_general_dilated, dimension_numbers=dn)
    Cin, d1 = w1.shape
    d2 = w3.shape[1]

    h = conv(x_nhwc, w1.reshape(1, 1, Cin, d1), (stride, stride), 'VALID')
    h = jnp.maximum(h * s1.reshape(1, 1, 1, d1) + b1.reshape(1, 1, 1, d1), 0.0)
    h = conv(h, w2, (1, 1), [(1, 1), (1, 1)])
    h = jnp.maximum(h * s2.reshape(1, 1, 1, d1) + b2.reshape(1, 1, 1, d1), 0.0)
    h = conv(h, w3.reshape(1, 1, d1, d2), (1, 1), 'VALID')
    h = h * s3.reshape(1, 1, 1, d2) + b3.reshape(1, 1, 1, d2)
    r = conv(x_nhwc, w4.reshape(1, 1, Cin, d2), (stride, stride), 'VALID')
    r = r * s4.reshape(1, 1, 1, d2) + b4.reshape(1, 1, 1, d2)
    return jnp.maximum(h + r, 0.0)


if __name__ == "__main__":
    key = jax.random.PRNGKey(0)
    k_x, k_p = jax.random.split(key)

    N, Cin, H, W = 2, 4, 16, 16
    d1, d2 = 8, 16
    stride = 2

    # PyTorch-style NCHW input, transposed to NHWC at the boundary.
    x_nchw = jax.random.normal(k_x, (N, Cin, H, W), jnp.float32)
    x_nhwc = jnp.transpose(x_nchw, (0, 2, 3, 1))

    params = make_params(k_p, Cin, d1, d2)
    ref = projection_block_ref(x_nhwc, params, stride=stride)

    # f32 compute path: exact comparison against the JAX reference.
    out = projection_block_pallas(x_nhwc, params, stride=stride,
                                  compute_dtype=jnp.float32)
    out = jax.block_until_ready(out)
    assert out.shape == (N, H // stride, W // stride, d2)
    assert jnp.allclose(out, ref, atol=1e-4, rtol=1e-4), \
        f"f32 max abs err = {jnp.max(jnp.abs(out - ref))}"

    # bf16 MXU path (default production path on v6e/v7x): loose tolerance because the
    # conv2/conv3 inputs are rounded to bf16 before the MXU (f32 accumulation/epilogue).
    out_bf = projection_block_pallas(x_nhwc, params, stride=stride,
                                     compute_dtype=jnp.bfloat16)
    out_bf = jax.block_until_ready(out_bf)
    err_bf = jnp.max(jnp.abs(out_bf - ref))
    assert err_bf < 0.25, f"bf16 max abs err = {err_bf}"

    print("KERNEL_OK")
</pallas_src>

<mosaic_0001>
module attributes {stable_mosaic.version = 11 : i64} {
  func.func @_projection_kernel(%arg0: i32, %arg1: memref<1x64x128xf32, #tpu.memory_space<vmem>>, %arg2: memref<128x256xf32, #tpu.memory_space<vmem>>, %arg3: memref<1x256xf32, #tpu.memory_space<vmem>>, %arg4: memref<1152x128xf32, #tpu.memory_space<vmem>>, %arg5: memref<1x128xf32, #tpu.memory_space<vmem>>, %arg6: memref<128x128xf32, #tpu.memory_space<vmem>>, %arg7: memref<1x128xf32, #tpu.memory_space<vmem>>, %arg8: memref<1x64x128xf32, #tpu.memory_space<vmem>>, %arg9: memref<10x24x128xf32, #tpu.memory_space<vmem>>) attributes {dimension_semantics = [#tpu.dimension_semantics<parallel>], iteration_bounds = array<i64: 2>, scalar_prefetch = 0 : i64, scratch_operands = 1 : i64, tpu.core_type = #tpu.core_type<tc>, window_params = [{transform_indices = @transform_0, window_bounds = array<i64: 1, 64, 128>}, {pipeline_mode = #tpu.pipeline_mode<synchronous>, transform_indices = @transform_1, window_bounds = array<i64: 128, 256>}, {pipeline_mode = #tpu.pipeline_mode<synchronous>, transform_indices = @transform_2, window_bounds = array<i64: 1, 256>}, {pipeline_mode = #tpu.pipeline_mode<synchronous>, transform_indices = @transform_3, window_bounds = array<i64: 1152, 128>}, {pipeline_mode = #tpu.pipeline_mode<synchronous>, transform_indices = @transform_4, window_bounds = array<i64: 1, 128>}, {pipeline_mode = #tpu.pipeline_mode<synchronous>, transform_indices = @transform_5, window_bounds = array<i64: 128, 128>}, {pipeline_mode = #tpu.pipeline_mode<synchronous>, transform_indices = @transform_6, window_bounds = array<i64: 1, 128>}, {transform_indices = @transform_7, window_bounds = array<i64: 1, 64, 128>}]} {
    %c0 = arith.constant 0 : index
    %c0_0 = arith.constant 0 : index
    %c0_1 = arith.constant 0 : index
    %0 = vector.load %arg1[%c0, %c0_0, %c0_1] : memref<1x64x128xf32, #tpu.memory_space<vmem>>, vector<1x64x128xf32>
    %1 = vector.shape_cast %0 : vector<1x64x128xf32> to vector<64x128xf32>
    %c0_2 = arith.constant 0 : index
    %c0_3 = arith.constant 0 : index
    %2 = vector.load %arg2[%c0_2, %c0_3] : memref<128x256xf32, #tpu.memory_space<vmem>>, vector<128x256xf32>
    %cst = arith.constant dense<0.000000e+00> : vector<64x256xf32>
    %3 = tpu.matmul %1, %2, %cst {dimension_numbers = #tpu.dot_dimension_numbers<[1], [0], [0], [1], [0, 0, 1, 1], [], []>} : vector<64x128xf32>, vector<128x256xf32>, vector<64x256xf32> -> vector<64x256xf32>
    %c0_4 = arith.constant 0 : index
    %c0_5 = arith.constant 0 : index
    %4 = vector.load %arg3[%c0_4, %c0_5] : memref<1x256xf32, #tpu.memory_space<vmem>>, vector<1x256xf32>
    %5 = vector.broadcast %4 : vector<1x256xf32> to vector<64x256xf32>
    %6 = arith.addf %3, %5 : vector<64x256xf32>
    %7 = vector.extract_strided_slice %6 {offsets = [0, 0], sizes = [64, 128], strides = [1, 1]} : vector<64x256xf32> to vector<64x128xf32>
    %cst_6 = arith.constant 0.000000e+00 : f32
    %8 = vector.broadcast %cst_6 : f32 to vector<64x128xf32>
    %9 = arith.maximumf %7, %8 : vector<64x128xf32>
    %10 = vector.extract_strided_slice %6 {offsets = [0, 128], sizes = [64, 128], strides = [1, 1]} : vector<64x256xf32> to vector<64x128xf32>
    %cst_7 = arith.constant 0.000000e+00 : f32
    %11 = vector.broadcast %cst_7 : f32 to vector<24x128xf32>
    %c0_8 = arith.constant 0 : index
    %c0_9 = arith.constant 0 : index
    %c0_10 = arith.constant 0 : index
    %12 = vector.load %arg9[%c0_8, %c0_9, %c0_10] : memref<10x24x128xf32, #tpu.memory_space<vmem>>, vector<1x24x128xf32>
    %13 = vector.shape_cast %12 : vector<1x24x128xf32> to vector<24x128xf32>
    %14 = vector.shape_cast %11 : vector<24x128xf32> to vector<1x24x128xf32>
    tpu.vector_store %arg9[%c0_8, %c0_9, %c0_10], %14 {strides = array<i32>} : memref<10x24x128xf32, #tpu.memory_space<vmem>>, vector<1x24x128xf32>,
    %cst_11 = arith.constant 0.000000e+00 : f32
    %15 = vector.broadcast %cst_11 : f32 to vector<24x128xf32>
    %c9 = arith.constant 9 : index
    %c0_12 = arith.constant 0 : index
    %c0_13 = arith.constant 0 : index
    %16 = vector.load %arg9[%c9, %c0_12, %c0_13] : memref<10x24x128xf32, #tpu.memory_space<vmem>>, vector<1x24x128xf32>
    %17 = vector.shape_cast %16 : vector<1x24x128xf32> to vector<24x128xf32>
    %18 = vector.shape_cast %15 : vector<24x128xf32> to vector<1x24x128xf32>
    tpu.vector_store %arg9[%c9, %c0_12, %c0_13], %18 {strides = array<i32>} : memref<10x24x128xf32, #tpu.memory_space<vmem>>, vector<1x24x128xf32>,
    %cst_14 = arith.constant 0.000000e+00 : f32
    %19 = vector.broadcast %cst_14 : f32 to vector<8x8x128xf32>
    %c1 = arith.constant 1 : index
    %c0_15 = arith.constant 0 : index
    %c0_16 = arith.constant 0 : index
    %20 = vector.load %arg9[%c1, %c0_15, %c0_16] : memref<10x24x128xf32, #tpu.memory_space<vmem>>, vector<8x8x128xf32>
    tpu.vector_store %arg9[%c1, %c0_15, %c0_16], %19 {strides = array<i32>} : memref<10x24x128xf32, #tpu.memory_space<vmem>>, vector<8x8x128xf32>,
    %cst_17 = arith.constant 0.000000e+00 : f32
    %21 = vector.broadcast %cst_17 : f32 to vector<8x8x128xf32>
    %c1_18 = arith.constant 1 : index
    %c16 = arith.constant 16 : index
    %c0_19 = arith.constant 0 : index
    %22 = vector.load %arg9[%c1_18, %c16, %c0_19] : memref<10x24x128xf32, #tpu.memory_space<vmem>>, vector<8x8x128xf32>
    tpu.vector_store %arg9[%c1_18, %c16, %c0_19], %21 {strides = array<i32>} : memref<10x24x128xf32, #tpu.memory_space<vmem>>, vector<8x8x128xf32>,
    %23 = vector.shape_cast %9 : vector<64x128xf32> to vector<8x8x128xf32>
    %c1_20 = arith.constant 1 : index
    %c8 = arith.constant 8 : index
    %c0_21 = arith.constant 0 : index
    %24 = vector.load %arg9[%c1_20, %c8, %c0_21] : memref<10x24x128xf32, #tpu.memory_space<vmem>>, vector<8x8x128xf32>
    tpu.vector_store %arg9[%c1_20, %c8, %c0_21], %23 {strides = array<i32>} : memref<10x24x128xf32, #tpu.memory_space<vmem>>, vector<8x8x128xf32>,
    %c0_22 = arith.constant 0 : index
    %c7 = arith.constant 7 : index
    %c0_23 = arith.constant 0 : index
    %25 = vector.load %arg9[%c0_22, %c7, %c0_23] : memref<10x24x128xf32, #tpu.memory_space<vmem>>, vector<8x8x128xf32>
    %26 = vector.shape_cast %25 : vector<8x8x128xf32> to vector<64x128xf32>
    %c0_24 = arith.constant 0 : index
    %c0_25 = arith.constant 0 : index
    %27 = vector.load %arg4[%c0_24, %c0_25] : memref<1152x128xf32, #tpu.memory_space<vmem>>, vector<128x128xf32>
    %cst_26 = arith.constant dense<0.000000e+00> : vector<64x128xf32>
    %28 = tpu.matmul %26, %27, %cst_26 {dimension_numbers = #tpu.dot_dimension_numbers<[1], [0], [0], [1], [0, 0, 1, 1], [], []>} : vector<64x128xf32>, vector<128x128xf32>, vector<64x128xf32> -> vector<64x128xf32>
    %c0_27 = arith.constant 0 : index
    %c8_28 = arith.constant 8 : index
    %c0_29 = arith.constant 0 : index
    %29 = vector.load %arg9[%c0_27, %c8_28, %c0_29] : memref<10x24x128xf32, #tpu.memory_space<vmem>>, vector<8x8x128xf32>
    %30 = vector.shape_cast %29 : vector<8x8x128xf32> to vector<64x128xf32>
    %c128 = arith.constant 128 : index
    %c0_30 = arith.constant 0 : index
    %31 = vector.load %arg4[%c128, %c0_30] : memref<1152x128xf32, #tpu.memory_space<vmem>>, vector<128x128xf32>
    %cst_31 = arith.constant dense<0.000000e+00> : vector<64x128xf32>
    %32 = tpu.matmul %30, %31, %cst_31 {dimension_numbers = #tpu.dot_dimension_numbers<[1], [0], [0], [1], [0, 0, 1, 1], [], []>} : vector<64x128xf32>, vector<128x128xf32>, vector<64x128xf32> -> vector<64x128xf32>
    %33 = arith.addf %28, %32 : vector<64x128xf32>
    %c0_32 = arith.constant 0 : index
    %c9_33 = arith.constant 9 : index
    %c0_34 = arith.constant 0 : index
    %34 = vector.load %arg9[%c0_32, %c9_33, %c0_34] : memref<10x24x128xf32, #tpu.memory_space<vmem>>, vector<8x8x128xf32>
    %35 = vector.shape_cast %34 : vector<8x8x128xf32> to vector<64x128xf32>
    %c256 = arith.constant 256 : index
    %c0_35 = arith.constant 0 : index
    %36 = vector.load %arg4[%c256, %c0_35] : memref<1152x128xf32, #tpu.memory_space<vmem>>, vector<128x128xf32>
    %cst_36 = arith.constant dense<0.000000e+00> : vector<64x128xf32>
    %37 = tpu.matmul %35, %36, %cst_36 {dimension_numbers = #tpu.dot_dimension_numbers<[1], [0], [0], [1], [0, 0, 1, 1], [], []>} : vector<64x128xf32>, vector<128x128xf32>, vector<64x128xf32> -> vector<64x128xf32>
    %38 = arith.addf %33, %37 : vector<64x128xf32>
    %c1_37 = arith.constant 1 : index
    %c7_38 = arith.constant 7 : index
    %c0_39 = arith.constant 0 : index
    %39 = vector.load %arg9[%c1_37, %c7_38, %c0_39] : memref<10x24x128xf32, #tpu.memory_space<vmem>>, vector<8x8x128xf32>
    %40 = vector.shape_cast %39 : vector<8x8x128xf32> to vector<64x128xf32>
    %c384 = arith.constant 384 : index
    %c0_40 = arith.constant 0 : index
    %41 = vector.load %arg4[%c384, %c0_40] : memref<1152x128xf32, #tpu.memory_space<vmem>>, vector<128x128xf32>
    %cst_41 = arith.constant dense<0.000000e+00> : vector<64x128xf32>
    %42 = tpu.matmul %40, %41, %cst_41 {dimension_numbers = #tpu.dot_dimension_numbers<[1], [0], [0], [1], [0, 0, 1, 1], [], []>} : vector<64x128xf32>, vector<128x128xf32>, vector<64x128xf32> -> vector<64x128xf32>
    %43 = arith.addf %38, %42 : vector<64x128xf32>
    %c1_42 = arith.constant 1 : index
    %c8_43 = arith.constant 8 : index
    %c0_44 = arith.constant 0 : index
    %44 = vector.load %arg9[%c1_42, %c8_43, %c0_44] : memref<10x24x128xf32, #tpu.memory_space<vmem>>, vector<8x8x128xf32>
    %45 = vector.shape_cast %44 : vector<8x8x128xf32> to vector<64x128xf32>
    %c512 = arith.constant 512 : index
    %c0_45 = arith.constant 0 : index
    %46 = vector.load %arg4[%c512, %c0_45] : memref<1152x128xf32, #tpu.memory_space<vmem>>, vector<128x128xf32>
    %cst_46 = arith.constant dense<0.000000e+00> : vector<64x128xf32>
    %47 = tpu.matmul %45, %46, %cst_46 {dimension_numbers = #tpu.dot_dimension_numbers<[1], [0], [0], [1], [0, 0, 1, 1], [], []>} : vector<64x128xf32>, vector<128x128xf32>, vector<64x128xf32> -> vector<64x128xf32>
    %48 = arith.addf %43, %47 : vector<64x128xf32>
    %c1_47 = arith.constant 1 : index
    %c9_48 = arith.constant 9 : index
    %c0_49 = arith.constant 0 : index
    %49 = vector.load %arg9[%c1_47, %c9_48, %c0_49] : memref<10x24x128xf32, #tpu.memory_space<vmem>>, vector<8x8x128xf32>
    %50 = vector.shape_cast %49 : vector<8x8x128xf32> to vector<64x128xf32>
    %c640 = arith.constant 640 : index
    %c0_50 = arith.constant 0 : index
    %51 = vector.load %arg4[%c640, %c0_50] : memref<1152x128xf32, #tpu.memory_space<vmem>>, vector<128x128xf32>
    %cst_51 = arith.constant dense<0.000000e+00> : vector<64x128xf32>
    %52 = tpu.matmul %50, %51, %cst_51 {dimension_numbers = #tpu.dot_dimension_numbers<[1], [0], [0], [1], [0, 0, 1, 1], [], []>} : vector<64x128xf32>, vector<128x128xf32>, vector<64x128xf32> -> vector<64x128xf32>
    %53 = arith.addf %48, %52 : vector<64x128xf32>
    %c2 = arith.constant 2 : index
    %c7_52 = arith.constant 7 : index
    %c0_53 = arith.constant 0 : index
    %54 = vector.load %arg9[%c2, %c7_52, %c0_53] : memref<10x24x128xf32, #tpu.memory_space<vmem>>, vector<8x8x128xf32>
    %55 = vector.shape_cast %54 : vector<8x8x128xf32> to vector<64x128xf32>
    %c768 = arith.constant 768 : index
    %c0_54 = arith.constant 0 : index
    %56 = vector.load %arg4[%c768, %c0_54] : memref<1152x128xf32, #tpu.memory_space<vmem>>, vector<128x128xf32>
    %cst_55 = arith.constant dense<0.000000e+00> : vector<64x128xf32>
    %57 = tpu.matmul %55, %56, %cst_55 {dimension_numbers = #tpu.dot_dimension_numbers<[1], [0], [0], [1], [0, 0, 1, 1], [], []>} : vector<64x128xf32>, vector<128x128xf32>, vector<64x128xf32> -> vector<64x128xf32>
    %58 = arith.addf %53, %57 : vector<64x128xf32>
    %c2_56 = arith.constant 2 : index
    %c8_57 = arith.constant 8 : index
    %c0_58 = arith.constant 0 : index
    %59 = vector.load %arg9[%c2_56, %c8_57, %c0_58] : memref<10x24x128xf32, #tpu.memory_space<vmem>>, vector<8x8x128xf32>
    %60 = vector.shape_cast %59 : vector<8x8x128xf32> to vector<64x128xf32>
    %c896 = arith.constant 896 : index
    %c0_59 = arith.constant 0 : index
    %61 = vector.load %arg4[%c896, %c0_59] : memref<1152x128xf32, #tpu.memory_space<vmem>>, vector<128x128xf32>
    %cst_60 = arith.constant dense<0.000000e+00> : vector<64x128xf32>
    %62 = tpu.matmul %60, %61, %cst_60 {dimension_numbers = #tpu.dot_dimension_numbers<[1], [0], [0], [1], [0, 0, 1, 1], [], []>} : vector<64x128xf32>, vector<128x128xf32>, vector<64x128xf32> -> vector<64x128xf32>
    %63 = arith.addf %58, %62 : vector<64x128xf32>
    %c2_61 = arith.constant 2 : index
    %c9_62 = arith.constant 9 : index
    %c0_63 = arith.constant 0 : index
    %64 = vector.load %arg9[%c2_61, %c9_62, %c0_63] : memref<10x24x128xf32, #tpu.memory_space<vmem>>, vector<8x8x128xf32>
    %65 = vector.shape_cast %64 : vector<8x8x128xf32> to vector<64x128xf32>
    %c1024 = arith.constant 1024 : index
    %c0_64 = arith.constant 0 : index
    %66 = vector.load %arg4[%c1024, %c0_64] : memref<1152x128xf32, #tpu.memory_space<vmem>>, vector<128x128xf32>
    %cst_65 = arith.constant dense<0.000000e+00> : vector<64x128xf32>
    %67 = tpu.matmul %65, %66, %cst_65 {dimension_numbers = #tpu.dot_dimension_numbers<[1], [0], [0], [1], [0, 0, 1, 1], [], []>} : vector<64x128xf32>, vector<128x128xf32>, vector<64x128xf32> -> vector<64x128xf32>
    %68 = arith.addf %63, %67 : vector<64x128xf32>
    %c0_66 = arith.constant 0 : index
    %c0_67 = arith.constant 0 : index
    %69 = vector.load %arg5[%c0_66, %c0_67] : memref<1x128xf32, #tpu.memory_space<vmem>>, vector<1x128xf32>
    %70 = vector.broadcast %69 : vector<1x128xf32> to vector<64x128xf32>
    %71 = arith.addf %68, %70 : vector<64x128xf32>
    %cst_68 = arith.constant 0.000000e+00 : f32
    %72 = vector.broadcast %cst_68 : f32 to vector<64x128xf32>
    %73 = arith.maximumf %71, %72 : vector<64x128xf32>
    %c0_69 = arith.constant 0 : index
    %c0_70 = arith.constant 0 : index
    %74 = vector.load %arg6[%c0_69, %c0_70] : memref<128x128xf32, #tpu.memory_space<vmem>>, vector<128x128xf32>
    %cst_71 = arith.constant dense<0.000000e+00> : vector<64x128xf32>
    %75 = tpu.matmul %73, %74, %cst_71 {dimension_numbers = #tpu.dot_dimension_numbers<[1], [0], [0], [1], [0, 0, 1, 1], [], []>} : vector<64x128xf32>, vector<128x128xf32>, vector<64x128xf32> -> vector<64x128xf32>
    %c0_72 = arith.constant 0 : index
    %c0_73 = arith.constant 0 : index
    %76 = vector.load %arg7[%c0_72, %c0_73] : memref<1x128xf32, #tpu.memory_space<vmem>>, vector<1x128xf32>
    %77 = vector.broadcast %76 : vector<1x128xf32> to vector<64x128xf32>
    %78 = arith.addf %75, %77 : vector<64x128xf32>
    %79 = arith.addf %78, %10 : vector<64x128xf32>
    %cst_74 = arith.constant 0.000000e+00 : f32
    %80 = vector.broadcast %cst_74 : f32 to vector<64x128xf32>
    %81 = arith.maximumf %79, %80 : vector<64x128xf32>
    %c0_75 = arith.constant 0 : index
    %c0_76 = arith.constant 0 : index
    %c0_77 = arith.constant 0 : index
    %82 = vector.load %arg8[%c0_75, %c0_76, %c0_77] : memref<1x64x128xf32, #tpu.memory_space<vmem>>, vector<1x64x128xf32>
    %83 = vector.shape_cast %82 : vector<1x64x128xf32> to vector<64x128xf32>
    %84 = vector.shape_cast %81 : vector<64x128xf32> to vector<1x64x128xf32>
    tpu.vector_store %arg8[%c0_75, %c0_76, %c0_77], %84 {strides = array<i32>} : memref<1x64x128xf32, #tpu.memory_space<vmem>>, vector<1x64x128xf32>,
    return
  }
  func.func @transform_0(%arg0: i32) -> (i32, i32, i32) {
    %c0_i32 = arith.constant 0 : i32
    %c0_i32_0 = arith.constant 0 : i32
    %c0_i32_1 = arith.constant 0 : i32
    return %arg0, %c0_i32, %c0_i32_0 : i32, i32, i32
  }
  func.func @transform_1(%arg0: i32) -> (i32, i32) {
    %c0_i32 = arith.constant 0 : i32
    %c0_i32_0 = arith.constant 0 : i32
    %c0_i32_1 = arith.constant 0 : i32
    return %c0_i32, %c0_i32_0 : i32, i32
  }
  func.func @transform_2(%arg0: i32) -> (i32, i32) {
    %c0_i32 = arith.constant 0 : i32
    %c0_i32_0 = arith.constant 0 : i32
    %c0_i32_1 = arith.constant 0 : i32
    return %c0_i32, %c0_i32_0 : i32, i32
  }
  func.func @transform_3(%arg0: i32) -> (i32, i32) {
    %c0_i32 = arith.constant 0 : i32
    %c0_i32_0 = arith.constant 0 : i32
    %c0_i32_1 = arith.constant 0 : i32
    return %c0_i32, %c0_i32_0 : i32, i32
  }
  func.func @transform_4(%arg0: i32) -> (i32, i32) {
    %c0_i32 = arith.constant 0 : i32
    %c0_i32_0 = arith.constant 0 : i32
    %c0_i32_1 = arith.constant 0 : i32
    return %c0_i32, %c0_i32_0 : i32, i32
  }
  func.func @transform_5(%arg0: i32) -> (i32, i32) {
    %c0_i32 = arith.constant 0 : i32
    %c0_i32_0 = arith.constant 0 : i32
    %c0_i32_1 = arith.constant 0 : i32
    return %c0_i32, %c0_i32_0 : i32, i32
  }
  func.func @transform_6(%arg0: i32) -> (i32, i32) {
    %c0_i32 = arith.constant 0 : i32
    %c0_i32_0 = arith.constant 0 : i32
    %c0_i32_1 = arith.constant 0 : i32
    return %c0_i32, %c0_i32_0 : i32, i32
  }
  func.func @transform_7(%arg0: i32) -> (i32, i32, i32) {
    %c0_i32 = arith.constant 0 : i32
    %c0_i32_0 = arith.constant 0 : i32
    %c0_i32_1 = arith.constant 0 : i32
    return %arg0, %c0_i32, %c0_i32_0 : i32, i32, i32
  }
}

</mosaic_0001>

<bundles_post_ra>
// kernel: tpu_custom_call.1
= control target key start
LH: loop header
LB: loop body
LE: loop exit
PB: predicated region body
PF: predicated region fallthrough
CT: control target
= control target key end

     0   :  { %s2325_s0 = inlined_call_operand.hbm [shape: f32[2,64,128], index: 0, kind: input, shape index: {}]   ;;  %s2326_s1 = inlined_call_operand.hbm [shape: f32[128,256], index: 1, kind: input, shape index: {}]   ;;  %s2327_s2 = inlined_call_operand.hbm [shape: f32[1,256], index: 2, kind: input, shape index: {}]   ;;  %s2328_s3 = inlined_call_operand.hbm [shape: f32[1152,128], index: 3, kind: input, shape index: {}]   ;;  %s2329_s4 = inlined_call_operand.vmem [shape: f32[1,128], index: 4, kind: input, shape index: {}]   ;;  %s2330_s5 = inlined_call_operand.hbm [shape: f32[128,128], index: 5, kind: input, shape index: {}]   ;;  %s2331_s6 = inlined_call_operand.vmem [shape: f32[1,128], index: 6, kind: input, shape index: {}]   ;;  %s2332_s7 = inlined_call_operand.hbm [shape: f32[2,64,128], index: 7, kind: output, shape index: {}]  }
   0x1   :  { %2335 = sst [smem:[#allocation17_spill]] %s2326_s1 }
   0x2   :  { %12 = vsyncpa [#allocation4], 0 }
   0x3   :  { %14 = vsyncpa [#allocation4 + $0x1], 0 }
   0x4   :  { %15 = vsyncpa [#allocation7], 0 }
   0x5   :  { %16 = vsyncpa [#allocation10], 0 }
   0x6   :  { %17 = vsyncpa [#allocation5], 0 }
   0x7   :  { %19 = vsyncpa [#allocation5 + $0x1], 0  ;;  %s1802_s24 = smov 0   ;;  %s1804_s25 = smov 0  }
   0x8   :  { %s1806_s26 = smov 0   ;;  %s1808_s27 = smov 0  }
   0x9 LB: > { %s1823_s28 = sadd.s32 4294967295, %s1749_s27   ;;  %s1405_s29 = sadd.s32 4294967294, %s1749_s27   ;;  %s1749_s27 = sphi %s1808_s27, %s2349_s27   ;;  %s1745_s26 = sphi %s1806_s26, %s2348_s26   ;;  %s1741_s25 = sphi %s1804_s25, %s2347_s25   ;;  %s1737_s24 = sphi %s1802_s24, %s2346_s24  }
   0xa   : > { %p45_p0 = scmp.ne.s32.totalorder %s1741_s25, %s1737_s24  ;;  %p46_p1 = scmp.eq.s32.totalorder %s1823_s28, 0 }
   0xb   : > { %p195_p2 = scmp.eq.s32.totalorder %s1823_s28, 1  ;;  %p201_p3 = scmp.eq.s32.totalorder %s1405_s29, 1 }
   0xc   : > { %p1832_p4 = por %p46_p1, %p45_p0  ;;  %p1406_p5 = scmp.ge.s32.totalorder %s1749_s27, 1 }
   0xd   : > { %p1837_p6 = por %p201_p3, %p45_p0  ;;  %p208_p7 = scmp.lt.s32.totalorder %s1749_s27, 3 }
   0xe   : > { %s2338_s1 = sld [smem:[#allocation17_spill]]  ;;  %s1751_s13 = smov [#allocation6]  }
   0xf   : > { %p1845_p8 = pnand %p1406_p5, %p208_p7  ;;  %s221_s14 = sshll.u32 %s1751_s13, 4  ;;  %s222_s14 = int_to_ptr.vmem [resolvable:$true] %s221_s14 }
  0x10   : > { %s245_s18 = sshll.u32 %s2328_s3, 4  ;;  %s1752_s19 = smov 256   ;;  %s246_s18 = int_to_ptr.hbm [resolvable:$true] %s245_s18 }
  0x11   : > { %p1449_p9 = pneg %p1845_p8  ;;  %s1753_s20 = smov 16  }
  0x12   : > { %s1754_s21 = smov [#allocation9]   ;;  %s2333_s23 = smov 128  }
  0x13   : > { %p1853_p10 = pnand %p1449_p9, %p46_p1  ;;  %s247_s22 = sshll.u32 %s1754_s21, 4  ;;  %s248_s22 = int_to_ptr.vmem [resolvable:$true] %s247_s22 }
  0x14   : > { %s219_s11 = sshll.u32 %s2338_s1, 4  ;;  %s2334_s29 = smov 8   ;;  %s220_s11 = int_to_ptr.hbm [resolvable:$true] %s219_s11 }
  0x15   : > { %1452 = dma.hbm_to_vmem [thread:$0]  (!%p1853_p10), %s220_s11, 4096, %s222_s14, [#allocation7], %s1752_s19, %s1752_s19, %s1753_s20  }
  0x16   : > { %1458 = dma.hbm_to_vmem [thread:$0]  (!%p1853_p10), %s246_s18, 18432, %s248_s22, [#allocation10], %s2333_s23, %s2333_s23, %s2334_s29  }
  0x17   : > { %s234_s11 = sshll.u32 %s2327_s2, 4  ;;  %s1757_s13 = smov [#allocation8]   ;;  %s235_s11 = int_to_ptr.hbm [resolvable:$true] %s234_s11 }
  0x18   : > { %s236_s14 = sshll.u32 %s1757_s13, 4  ;;  %s262_s19 = sshll.u32 %s2330_s5, 4  ;;  %s237_s14 = int_to_ptr.vmem [resolvable:$true] %s236_s14  ;;  %s263_s19 = int_to_ptr.hbm [resolvable:$true] %s262_s19 }
  0x19   : > { %1455 = dma.hbm_to_vmem [thread:$0]  (!%p1853_p10), %s235_s11, 32, %s237_s14, [#allocation7]  }
  0x1a   : > { %s1758_s18 = smov [#allocation11]   ;;  %s1882_s21 = sadd.s32 1, %s1749_s27  }
  0x1b   : > { %s264_s20 = sshll.u32 %s1758_s18, 4  ;;  %s32_s22 = sadd.s32 1, %s1745_s26  ;;  %s265_s20 = int_to_ptr.vmem [resolvable:$true] %s264_s20 }
  0x1c   : > { %1461 = dma.hbm_to_vmem [thread:$0]  (!%p1853_p10), %s263_s19, 2048, %s265_s20, [#allocation10], %s2333_s23, %s2333_s23, %s2334_s29  }
  0x1d   : > { %s29_s9 = ssub.s32 %s1749_s27, %s1882_s21  ;;  %p39_p12 = scmp.ne.s32.totalorder %s1745_s26, %s1741_s25 }
  0x1e   : > { %p30_p13 = scmp.eq.s32.totalorder %s29_s9, 0  ;;  %p40_p0 = scmp.eq.s32.totalorder %s1749_s27, 0 }
  0x1f   : > { %p1892_p3 = por %p195_p2, %p39_p12  ;;  %p1474_p5 = scmp.lt.s32.totalorder %s1749_s27, 2 }
  0x20   : > { %s1898_s11 = scalar_select %p30_p13, %s1745_s26, %s32_s22  }
  0x21   : > { %p41_p7 = por %p40_p0, %p39_p12  ;;  %s281_s15 = sand.u32 1, %s1745_s26  }
  0x22   : > { %s1412_s13 = sshll.u32 %s281_s15, 6  ;;  %s1427_s14 = sshll.u32 %s1749_s27, 6 }
  0x23   : > { %s290_s19 = scalar_lea.hbm %s2325_s0, %s1427_s14  ;;  %s285_s18 = scalar_lea.vmem [#allocation3], %s1412_s13 }
  0x24   : > { %s293_s20 = sshll.u32 %s285_s18, 4  ;;  %s291_s9 = sshll.u32 %s290_s19, 4  ;;  %s294_s20 = int_to_ptr.vmem [resolvable:$true] %s293_s20  ;;  %s292_s9 = int_to_ptr.hbm [resolvable:$true] %s291_s9 }
  0x25   : > { %p1905_p2 = pnand %p1474_p5, %p41_p7  ;;  %s282_s22 = scalar_lea.sflag [#allocation4], %s281_s15 }
  0x26   : > { %s1645_s29 = sshra.s32 %s292_s9, 4  ;;  %s1652_s16 = scalar_lea.hbm %s2325_s0, 128  ;;  %s1646_s29 = int_to_ptr.hbm [resolvable:$true] %s1645_s29 }
  0x27   : > { %s1647_s1 = scalar_lea.hbm %s1646_s29, 64  ;;  %p1649_p10 = pneg %p1905_p2 }
  0x28   : > { %p1648_p9 = scmp.ne.s32.totalorder %s1646_s29, %s1647_s1  ;;  %p1653_p0 = scmp.lt.s32.totalorder %s1646_s29, %s2325_s0 }
  0x29   : > { %p1654_p5 = scmp.lt.s32.totalorder %s1652_s16, %s1647_s1 }
  0x2a   : > { %p1650_p12 = pnand %p1649_p10, %p1648_p9 }
  0x2b   : > { %p1655_p7 = por %p1654_p5, %p1653_p0 }
  0x2c   : > { %p1651_p13 = pneg %p1650_p12 }
  0x2e   : > { %p1656_p11 = pnand %p1655_p7, %p1651_p13 }
  0x30   : > { %1659 = shalt.err (!%p1656_p11)
}
  0x31   : > { %s2343_s15 = smov 8   ;;  %s2344_s18 = smov 128  }
  0x32   : > { %1465 = dma.hbm_to_vmem [thread:$0]  (!%p1905_p2), %s292_s9, 1024, %s294_s20, %s282_s22, %s2344_s18, %s2344_s18, %s2343_s15  }
  0x33   : > { %305 = sbr.rel (%p1845_p8) target bundleno = 680 (0x2a8), region = 48  ;;  %s1925_s14 = sand.u32 (!%p1845_p8), 1, %s1741_s25  }
  0x34   : > { %s1416_s1 = sshll.u32 (!%p1845_p8), %s1925_s14, 6  ;;  %s308_s29 = scalar_lea.sflag (!%p1845_p8), [#allocation4], %s1925_s14 }
  0x35   : > { %s1931_s13 = scalar_lea.vmem (!%p1845_p8), [#allocation3], %s1416_s1 }
  0x38   : > { %1720 = dma.done.wait (%p1832_p4), %s308_s29, 1024  }
  0x39   : > { %1722 = vsyncadd (%p1832_p4), %s308_s29, 4294966272 }
  0x3a   : > { %1724 = dma.done.wait (%p46_p1), [#allocation7], 4128  }
  0x3b   : > { %1726 = vsyncadd (%p46_p1), [#allocation7], 4294963168 }
  0x3c   : > { %1728 = dma.done.wait (%p46_p1), [#allocation10], 20480  }
  0x3d   : > { %1730 = vsyncadd (%p46_p1), [#allocation10], 4294946816  ;;  %v401_v0 = vld [vmem:[#allocation6 + $0xf0] sm:$0xff]  ;;  %v399_v1 = vld [vmem:[#allocation6 + $0xe0] sm:$0xff]  ;;  %s2274_s9 = scalar_lea.vmem [#allocation12], %s1416_s1  ;;  %s1428_s22 = sshll.u32 %s1823_s28, 6 }
  0x3e   : > { %409 = vmatpush.msra.mxu0 %v401_v0  ;;  %v397_v2 = vld [vmem:[#allocation6 + $0xd0] sm:$0xff]  ;;  %v395_v3 = vld [vmem:[#allocation6 + $0xc0] sm:$0xff]  ;;  %v1950_v17 = vld [vmem:[%s1931_s13 + $0x8] sm:$0xff]  ;;  %s1290_s19 = scalar_lea.hbm %s2332_s7, %s1428_s22  ;;  %s1291_s15 = sshll.u32 %s2274_s9, 4  ;;  %s1292_s15 = int_to_ptr.vmem [resolvable:$true] %s1291_s15 }
  0x3f   : > { %v393_v4 = vld [vmem:[#allocation6 + $0xb0] sm:$0xff]  ;;  %v391_v5 = vld [vmem:[#allocation6 + $0xa0] sm:$0xff]  ;;  %v402_v18 = vld [vmem:[#allocation6 + $0xf8] sm:$0xff]  ;;  %s1293_s18 = sshll.u32 %s1290_s19, 4  ;;  %s1279_s1 = scalar_lea.sflag [#allocation5], %s1925_s14  ;;  %s1294_s18 = int_to_ptr.hbm [resolvable:$true] %s1293_s18 }
  0x40   : > { %410 = vmatpush.msra.mxu0 %v399_v1  ;;  %v389_v6 = vld [vmem:[#allocation6 + $0x90] sm:$0xff]  ;;  %v387_v7 = vld [vmem:[#allocation6 + $0x80] sm:$0xff]  ;;  %v400_v19 = vld [vmem:[#allocation6 + $0xe8] sm:$0xff]  ;;  %450 = vmatpush.msra.mxu1 %v402_v18  ;;  %s1689_s28 = sshra.s32 %s1294_s18, 4  ;;  %s1695_s12 = scalar_lea.hbm %s2332_s7, 128  ;;  %s1690_s28 = int_to_ptr.hbm [resolvable:$true] %s1689_s28 }
  0x41   : > { %v385_v8 = vld [vmem:[#allocation6 + $0x70] sm:$0xff]  ;;  %v383_v9 = vld [vmem:[#allocation6 + $0x60] sm:$0xff]  ;;  %v398_v20 = vld [vmem:[#allocation6 + $0xd8] sm:$0xff]  ;;  %s1691_s29 = scalar_lea.hbm %s1690_s28, 64  ;;  %p1696_p11 = scmp.lt.s32.totalorder %s1690_s28, %s2332_s7 }
  0x42   : > { %411 = vmatpush.msra.mxu0 %v397_v2  ;;  %v381_v10 = vld [vmem:[#allocation6 + $0x50] sm:$0xff]  ;;  %v379_v11 = vld [vmem:[#allocation6 + $0x40] sm:$0xff]  ;;  %451 = vmatpush.msra.mxu1 %v400_v19  ;;  %v396_v22 = vld [vmem:[#allocation6 + $0xc8] sm:$0xff]  ;;  %p1692_p1 = scmp.ne.s32.totalorder %s1690_s28, %s1691_s29  ;;  %p1697_p2 = scmp.lt.s32.totalorder %s1695_s12, %s1691_s29 }
  0x43   : > { %v377_v12 = vld [vmem:[#allocation6 + $0x30] sm:$0xff]  ;;  %v375_v13 = vld [vmem:[#allocation6 + $0x20] sm:$0xff]  ;;  %v394_v23 = vld [vmem:[#allocation6 + $0xb8] sm:$0xff] }
  0x44   : > { %412 = vmatpush.msra.mxu0 %v395_v3  ;;  %v373_v14 = vld [vmem:[#allocation6 + $0x10] sm:$0xff]  ;;  %v371_v15 = vld [vmem:[#allocation6] sm:$0xff]  ;;  %452 = vmatpush.msra.mxu1 %v398_v20  ;;  %v392_v24 = vld [vmem:[#allocation6 + $0xa8] sm:$0xff]  ;;  %p1693_p4 = pnand %p1692_p1, %p1892_p3  ;;  %p1698_p9 = por %p1697_p2, %p1696_p11 }
  0x45   : > { %v1946_v16 = vld [vmem:[%s1931_s13] sm:$0xff]  ;;  %v1954_v21 = vld [vmem:[%s1931_s13 + $0x10] sm:$0xff]  ;;  %v390_v25 = vld [vmem:[#allocation6 + $0x98] sm:$0xff] }
  0x46   : > { %413 = vmatpush.msra.mxu0 %v393_v4  ;;  %453 = vmatpush.msra.mxu1 %v396_v22  ;;  %v1958_v26 = vld [vmem:[%s1931_s13 + $0x18] sm:$0xff]  ;;  %v388_v27 = vld [vmem:[#allocation6 + $0x88] sm:$0xff]  ;;  %v1962_v33 = vld [vmem:[%s1931_s13 + $0x20] sm:$0xff]  ;;  %p1694_p8 = pneg %p1693_p4 }
  0x47   : > { %v386_v28 = vld [vmem:[#allocation6 + $0x78] sm:$0xff]  ;;  %v384_v29 = vld [vmem:[#allocation6 + $0x68] sm:$0xff]  ;;  %v1971_v60 = vld [vmem:[%s1931_s13 + $0x30] sm:$0xff] }
  0x48   : > { %414 = vmatpush.msra.mxu0 %v391_v5  ;;  %454 = vmatpush.msra.mxu1 %v394_v23  ;;  %v578_v30 = vld [vmem:[#allocation9 + $0xf8] sm:$0xff]  ;;  %v380_v34 = vld [vmem:[#allocation6 + $0x48] sm:$0xff]  ;;  %v577_v37 = vld [vmem:[#allocation9 + $0xf0] sm:$0xff]  ;;  %p1699_p10 = pnand %p1698_p9, %p1694_p8 }
  0x49   : > { %v554_v31 = vld [vmem:[#allocation9 + $0x78] sm:$0xff]  ;;  %579 = vmatpush.msra.mxu2 %v578_v30  ;;  %v376_v36 = vld [vmem:[#allocation6 + $0x28] sm:$0xff]  ;;  %v553_v38 = vld [vmem:[#allocation9 + $0x70] sm:$0xff] }
  0x4a   : > { %415 = vmatpush.msra.mxu0 %v389_v6  ;;  %455 = vmatpush.msra.mxu1 %v392_v24  ;;  %v382_v32 = vld [vmem:[#allocation6 + $0x58] sm:$0xff]  ;;  %v576_v40 = vld [vmem:[#allocation9 + $0xe8] sm:$0xff]  ;;  %v575_v44 = vld [vmem:[#allocation9 + $0xe0] sm:$0xff] }
  0x4b   : > { %620 = vmatpush.msra.mxu3 %v554_v31  ;;  %v378_v35 = vld [vmem:[#allocation6 + $0x38] sm:$0xff]  ;;  %580 = vmatpush.msra.mxu2 %v577_v37  ;;  %v552_v41 = vld [vmem:[#allocation9 + $0x68] sm:$0xff]  ;;  %v551_v46 = vld [vmem:[#allocation9 + $0x60] sm:$0xff] }
  0x4c   : > { %416 = vmatpush.msra.mxu0 %v387_v7  ;;  %456 = vmatpush.msra.mxu1 %v390_v25  ;;  %v684_v39 = vld [vmem:[#allocation9 + $0x178] sm:$0xff]  ;;  %v683_v42 = vld [vmem:[#allocation9 + $0x170] sm:$0xff]  ;;  %v1966_v45 = vld [vmem:[%s1931_s13 + $0x28] sm:$0xff] }
  0x4d   : > { %v374_v43 = vld [vmem:[#allocation6 + $0x18] sm:$0xff]  ;;  %621 = vmatpush.msra.mxu3 %v553_v38  ;;  %581 = vmatpush.msra.mxu2 %v576_v40  ;;  %v372_v47 = vld [vmem:[#allocation6 + $0x8] sm:$0xff] }
  0x4e   : > { %417 = vmatpush.msra.mxu0 %v385_v8  ;;  %457 = vmatpush.msra.mxu1 %v388_v27  ;;  %v682_v48 = vld [vmem:[#allocation9 + $0x168] sm:$0xff]  ;;  %v574_v49 = vld [vmem:[#allocation9 + $0xd8] sm:$0xff]  ;;  %v681_v51 = vld [vmem:[#allocation9 + $0x160] sm:$0xff] }
  0x4f   : > { %622 = vmatpush.msra.mxu3 %v552_v41  ;;  %582 = vmatpush.msra.mxu2 %v575_v44  ;;  %v550_v50 = vld [vmem:[#allocation9 + $0x58] sm:$0xff]  ;;  %v573_v52 = vld [vmem:[#allocation9 + $0xd0] sm:$0xff]  ;;  %v572_v56 = vld [vmem:[#allocation9 + $0xc8] sm:$0xff] }
  0x50   : > { %418 = vmatpush.msra.mxu0 %v383_v9  ;;  %458 = vmatpush.msra.mxu1 %v386_v28  ;;  %v549_v53 = vld [vmem:[#allocation9 + $0x50] sm:$0xff]  ;;  %v680_v54 = vld [vmem:[#allocation9 + $0x158] sm:$0xff]  ;;  %v548_v57 = vld [vmem:[#allocation9 + $0x48] sm:$0xff] }
  0x51   : > { %623 = vmatpush.msra.mxu3 %v551_v46  ;;  %583 = vmatpush.msra.mxu2 %v574_v49  ;;  %v757_v55 = vld [vmem:[#allocation9 + $0x1f8] sm:$0xff]  ;;  %v679_v58 = vld [vmem:[#allocation9 + $0x150] sm:$0xff]  ;;  %v571_v61 = vld [vmem:[#allocation9 + $0xc0] sm:$0xff] }
  0x52   : > { %419 = vmatpush.msra.mxu0 %v381_v10  ;;  %459 = vmatpush.msra.mxu1 %v384_v29  ;;  %v756_v59 = vld [vmem:[#allocation9 + $0x1f0] sm:$0xff]  ;;  %v547_v62 = vld [vmem:[#allocation9 + $0x40] sm:$0xff]  ;;  %v678_v63 = vld [vmem:[#allocation9 + $0x148] sm:$0xff] }
  0x53   : > { %624 = vmatpush.msra.mxu3 %v550_v50  ;;  %584 = vmatpush.msra.mxu2 %v573_v52  ;;  %v570_v0 = vld [vmem:[#allocation9 + $0xb8] sm:$0xff]  ;;  %v755_v1 = vld [vmem:[#allocation9 + $0x1e8] sm:$0xff]  ;;  %v677_v3 = vld [vmem:[#allocation9 + $0x140] sm:$0xff] }
  0x54   : > { %420 = vmatpush.msra.mxu0 %v379_v11  ;;  %460 = vmatpush.msra.mxu1 %v382_v32  ;;  %v546_v2 = vld [vmem:[#allocation9 + $0x38] sm:$0xff]  ;;  %v754_v4 = vld [vmem:[#allocation9 + $0x1e0] sm:$0xff]  ;;  %v569_v5 = vld [vmem:[#allocation9 + $0xb0] sm:$0xff] }
  0x55   : > { %625 = vmatpush.msra.mxu3 %v549_v53  ;;  %585 = vmatpush.msra.mxu2 %v572_v56  ;;  %v545_v6 = vld [vmem:[#allocation9 + $0x30] sm:$0xff]  ;;  %v676_v7 = vld [vmem:[#allocation9 + $0x138] sm:$0xff]  ;;  %v568_v8 = vld [vmem:[#allocation9 + $0xa8] sm:$0xff] }
  0x56   : > { %421 = vmatpush.msra.mxu0 %v377_v12  ;;  %461 = vmatpush.msra.mxu1 %v380_v34  ;;  %v753_v9 = vld [vmem:[#allocation9 + $0x1d8] sm:$0xff]  ;;  %v544_v10 = vld [vmem:[#allocation9 + $0x28] sm:$0xff]  ;;  %v567_v12 = vld [vmem:[#allocation9 + $0xa0] sm:$0xff] }
  0x57   : > { %626 = vmatpush.msra.mxu3 %v548_v57  ;;  %586 = vmatpush.msra.mxu2 %v571_v61  ;;  %v1976_v11 = vld [vmem:[%s1931_s13 + $0x38] sm:$0xff]  ;;  %v673_v20 = vld [vmem:[#allocation9 + $0x120] sm:$0xff]  ;;  %v564_v28 = vld [vmem:[#allocation9 + $0x88] sm:$0xff] }
  0x58   : > { %422 = vmatpush.msra.mxu0 %v375_v13  ;;  %462 = vmatpush.msra.mxu1 %v378_v35  ;;  %v675_v13 = vld [vmem:[#allocation9 + $0x130] sm:$0xff]  ;;  %v566_v18 = vld [vmem:[#allocation9 + $0x98] sm:$0xff]  ;;  %v750_v22 = vld [vmem:[#allocation9 + $0x1c0] sm:$0xff] }
  0x59   : > { %627 = vmatpush.msra.mxu3 %v547_v62  ;;  %587 = vmatpush.msra.mxu2 %v570_v0  ;;  %v542_v19 = vld [vmem:[#allocation9 + $0x18] sm:$0xff]  ;;  %v565_v23 = vld [vmem:[#allocation9 + $0x90] sm:$0xff]  ;;  %v540_v29 = vld [vmem:[#allocation9 + $0x8] sm:$0xff] }
  0x5a   : > { %423 = vmatpush.msra.mxu0 %v373_v14  ;;  %463 = vmatpush.msra.mxu1 %v376_v36  ;;  %v752_v14 = vld [vmem:[#allocation9 + $0x1d0] sm:$0xff]  ;;  %v672_v25 = vld [vmem:[#allocation9 + $0x118] sm:$0xff]  ;;  %v539_v30 = vld [vmem:[#allocation9] sm:$0xff] }
  0x5b   : > { %628 = vmatpush.msra.mxu3 %v546_v2  ;;  %588 = vmatpush.msra.mxu2 %v569_v5  ;;  %v541_v24 = vld [vmem:[#allocation9 + $0x10] sm:$0xff]  ;;  %v749_v27 = vld [vmem:[#allocation9 + $0x1b8] sm:$0xff]  ;;  %v670_v34 = vld [vmem:[#allocation9 + $0x108] sm:$0xff] }
  0x5c   : > { %424 = vmatpush.msra.mxu0 %v371_v15  ;;  %464 = vmatpush.msra.mxu1 %v374_v43  ;;  %v543_v15 = vld [vmem:[#allocation9 + $0x20] sm:$0xff]  ;;  %v671_v32 = vld [vmem:[#allocation9 + $0x110] sm:$0xff]  ;;  %v747_v35 = vld [vmem:[#allocation9 + $0x1a8] sm:$0xff] }
  0x5d   : > { %425 = vmatmul.f32.vlgmr.msra.gmra.mxu0 %v1946_v16  ;;  %629 = vmatpush.msra.mxu3 %v545_v6  ;;  %v669_v36 = vld [vmem:[#allocation9 + $0x100] sm:$0xff]  ;;  %v745_v40 = vld [vmem:[#allocation9 + $0x198] sm:$0xff]  ;;  %v744_v41 = vld [vmem:[#allocation9 + $0x190] sm:$0xff] }
  0x5e   : > { %685 = vmatpush.msrb.mxu0 %v684_v39  ;;  %465 = vmatpush.msra.mxu1 %v372_v47  ;;  %v746_v37 = vld [vmem:[#allocation9 + $0x1a0] sm:$0xff]  ;;  %v830_v39 = vld [vmem:[#allocation9 + $0x278] sm:$0xff]  ;;  %v829_v44 = vld [vmem:[#allocation9 + $0x270] sm:$0xff] }
  0x5f   : > { %466 = vmatmul.f32.vlgmr.msra.gmra.mxu1 %v1946_v16  ;;  %589 = vmatpush.msra.mxu2 %v568_v8  ;;  %v674_v16 = vld [vmem:[#allocation9 + $0x128] sm:$0xff]  ;;  %v742_v43 = vld [vmem:[#allocation9 + $0x180] sm:$0xff]  ;;  %v826_v47 = vld [vmem:[#allocation9 + $0x258] sm:$0xff] }
  0x60   : > { %686 = vmatpush.msrb.mxu0 %v683_v42  ;;  %758 = vmatpush.msrb.mxu1 %v757_v55  ;;  %v743_v42 = vld [vmem:[#allocation9 + $0x188] sm:$0xff]  ;;  %v827_v46 = vld [vmem:[#allocation9 + $0x260] sm:$0xff]  ;;  %v825_v50 = vld [vmem:[#allocation9 + $0x250] sm:$0xff] }
  0x61   : > { %630 = vmatpush.msra.mxu3 %v544_v10  ;;  %590 = vmatpush.msra.mxu2 %v567_v12  ;;  %v823_v55 = vld [vmem:[#allocation9 + $0x240] sm:$0xff]  ;;  %v822_v56 = vld [vmem:[#allocation9 + $0x238] sm:$0xff]  ;;  %v976_v61 = vld [vmem:[#allocation9 + $0x370] sm:$0xff] }
  0x62   : > { %687 = vmatpush.msrb.mxu0 %v682_v48  ;;  %759 = vmatpush.msrb.mxu1 %v756_v59  ;;  %v2008_v48 = vld [vmem:[#allocation8] sm:$0x3]  ;;  %v975_v0 = vld [vmem:[#allocation9 + $0x368] sm:$0xff]  ;;  %v821_v5 = vld [vmem:[#allocation9 + $0x230] sm:$0xff] }
  0x63   : > { %631 = vmatpush.msra.mxu3 %v543_v15  ;;  %591 = vmatpush.msra.mxu2 %v566_v18  ;;  %v2011_v49 = vperm.slane %v2008_v48, 0  ;;  %v903_v57 = vld [vmem:[#allocation9 + $0x2f8] sm:$0xff]  ;;  %v974_v6 = vld [vmem:[#allocation9 + $0x360] sm:$0xff]  ;;  %v898_v12 = vld [vmem:[#allocation9 + $0x2d0] sm:$0xff] }
  0x64   : > { %688 = vmatpush.msrb.mxu0 %v681_v51  ;;  %760 = vmatpush.msrb.mxu1 %v755_v1  ;;  %v824_v51 = vld [vmem:[#allocation9 + $0x248] sm:$0xff]  ;;  %v899_v8 = vld [vmem:[#allocation9 + $0x2d8] sm:$0xff]  ;;  %v972_v15 = vld [vmem:[#allocation9 + $0x350] sm:$0xff] }
  0x65   : > { %428 = vmatmul.f32.gmra.mxu0 %v1950_v17  ;;  %632 = vmatpush.msra.mxu3 %v542_v19  ;;  %v1050_v10 = vld [vmem:[#allocation9 + $0x3f8] sm:$0xff]  ;;  %v897_v18 = vld [vmem:[#allocation9 + $0x2c8] sm:$0xff] }
  0x66   : > { %689 = vmatpush.msrb.mxu0 %v680_v54  ;;  %761 = vmatpush.msrb.mxu1 %v754_v4  ;;  %v900_v4 = vld [vmem:[#allocation9 + $0x2e0] sm:$0xff] }
  0x67   : > { %469 = vmatmul.f32.gmra.mxu1 %v1950_v17  ;;  %v751_v17 = vld [vmem:[#allocation9 + $0x1c8] sm:$0xff]  ;;  %592 = vmatpush.msra.mxu2 %v565_v23 }
  0x68   : > { %690 = vmatpush.msrb.mxu0 %v679_v58  ;;  %762 = vmatpush.msrb.mxu1 %v753_v9  ;;  %v977_v58 = vld [vmem:[#allocation9 + $0x378] sm:$0xff]  ;;  %v971_v23 = vld [vmem:[#allocation9 + $0x348] sm:$0xff] }
  0x69   : > { %633 = vmatpush.msra.mxu3 %v541_v24  ;;  %593 = vmatpush.msra.mxu2 %v564_v28  ;;  %v973_v9 = vld [vmem:[#allocation9 + $0x358] sm:$0xff]  ;;  %v1047_v24 = vld [vmem:[#allocation9 + $0x3e0] sm:$0xff] }
  0x6a   : > { %691 = vmatpush.msrb.mxu0 %v678_v63  ;;  %763 = vmatpush.msrb.mxu1 %v752_v14  ;;  %v901_v63 = vld [vmem:[#allocation9 + $0x2e8] sm:$0xff]  ;;  %v970_v28 = vld [vmem:[#allocation9 + $0x340] sm:$0xff] }
  0x6b   : > { %634 = vmatpush.msra.mxu3 %v540_v29  ;;  %v1046_v29 = vld [vmem:[#allocation9 + $0x3d8] sm:$0xff] }
  0x6c   : > { %692 = vmatpush.msrb.mxu0 %v677_v3  ;;  %764 = vmatpush.msrb.mxu1 %v751_v17 }
  0x6d   : > { %431 = vmatmul.f32.gmra.mxu0 %v1954_v21  ;;  %635 = vmatpush.msra.mxu3 %v539_v30  ;;  %v895_v30 = vld [vmem:[#allocation9 + $0x2b8] sm:$0xff] }
  0x6e   : > { %693 = vmatpush.msrb.mxu0 %v676_v7  ;;  %765 = vmatpush.msrb.mxu1 %v750_v22  ;;  %v820_v7 = vld [vmem:[#allocation9 + $0x228] sm:$0xff]  ;;  %v819_v22 = vld [vmem:[#allocation9 + $0x220] sm:$0xff] }
  0x6f   : > { %472 = vmatmul.f32.gmra.mxu1 %v1954_v21  ;;  %v1759_v21 = vmov 0.0   ;;  %904 = vmatpush.msrb.mxu3 %v903_v57 }
  0x70   : > { %694 = vmatpush.msrb.mxu0 %v675_v13  ;;  %766 = vmatpush.msrb.mxu1 %v749_v27  ;;  %500 = vst [vmem:[#allocation2 + $0x8] sm:$0xff] %v1759_v21  ;;  %v1049_v13 = vld [vmem:[#allocation9 + $0x3f0] sm:$0xff]  ;;  %v818_v27 = vld [vmem:[#allocation9 + $0x218] sm:$0xff] }
  0x71   : > { %499 = vst [vmem:[#allocation2] sm:$0xff] %v1759_v21 }
  0x72   : > { %695 = vmatpush.msrb.mxu0 %v674_v16  ;;  %501 = vst [vmem:[#allocation2 + $0x10] sm:$0xff] %v1759_v21  ;;  %v1048_v16 = vld [vmem:[#allocation9 + $0x3e8] sm:$0xff] }
  0x73   : > { %503 = vst [vmem:[#allocation2 + $0xd8] sm:$0xff] %v1759_v21 }
  0x74   : > { %696 = vmatpush.msrb.mxu0 %v673_v20  ;;  %504 = vst [vmem:[#allocation2 + $0xe0] sm:$0xff] %v1759_v21 }
  0x75   : > { %434 = vmatmul.f32.gmra.mxu0 %v1958_v26  ;;  %505 = vst [vmem:[#allocation2 + $0xe8] sm:$0xff] %v1759_v21 }
  0x76   : > { %697 = vmatpush.msrb.mxu0 %v672_v25  ;;  %507 = vst [vmem:[#allocation2 + $0x18] sm:$0xff] %v1759_v21  ;;  %v896_v25 = vld [vmem:[#allocation9 + $0x2c0] sm:$0xff] }
  0x77   : > { %475 = vmatmul.f32.gmra.mxu1 %v1958_v26  ;;  %v563_v26 = vld [vmem:[#allocation9 + $0x80] sm:$0xff]  ;;  %508 = vst [vmem:[#allocation2 + $0x30] sm:$0xff] %v1759_v21 }
  0x78   : > { %594 = vmatpush.msra.mxu2 %v563_v26  ;;  %509 = vst [vmem:[#allocation2 + $0x48] sm:$0xff] %v1759_v21  ;;  %v531_v31 = vld [vmem:[#allocation2 + $0x7] sm:$0xff]  ;;  %698 = vmatpush.msrb.mxu0 %v671_v32 }
  0x79   : > { %595 = vmatmul.f32.vlgmr.msra.gmra.mxu2 %v1759_v21  ;;  %510 = vst [vmem:[#allocation2 + $0x60] sm:$0xff] %v1759_v21  ;;  %636 = vmatmul.f32.vlgmr.msra.gmra.mxu3 %v531_v31  ;;  %v661_v38 = vld [vmem:[#allocation2 + $0x9] sm:$0xff] }
  0x7a   : > { %511 = vst [vmem:[#allocation2 + $0x78] sm:$0xff] %v1759_v21  ;;  %699 = vmatpush.msrb.mxu0 %v670_v34  ;;  %831 = vmatpush.msrb.mxu2 %v830_v39  ;;  %v969_v32 = vld [vmem:[#allocation9 + $0x338] sm:$0xff]  ;;  %v817_v34 = vld [vmem:[#allocation9 + $0x210] sm:$0xff] }
  0x7b   : > { %512 = vst [vmem:[#allocation2 + $0x90] sm:$0xff] %v1759_v21  ;;  %v968_v39 = vld [vmem:[#allocation9 + $0x330] sm:$0xff] }
  0x7c   : > { %513 = vst [vmem:[#allocation2 + $0xa8] sm:$0xff] %v1759_v21  ;;  %700 = vmatpush.msrb.mxu0 %v669_v36  ;;  %832 = vmatpush.msrb.mxu2 %v829_v44  ;;  %v894_v36 = vld [vmem:[#allocation9 + $0x2b0] sm:$0xff]  ;;  %v1043_v44 = vld [vmem:[#allocation9 + $0x3c0] sm:$0xff] }
  0x7d   : > { %437 = vmatmul.f32.gmra.mxu0 %v1962_v33  ;;  %514 = vst [vmem:[#allocation2 + $0xc0] sm:$0xff] %v1759_v21 }
  0x7e   : > { %515 = vst [vmem:[#allocation2 + $0x28] sm:$0xff] %v1759_v21  ;;  %978 = vmatpush.msra.mxu0 %v977_v58  ;;  %v965_v58 = vld [vmem:[#allocation9 + $0x318] sm:$0xff] }
  0x7f   : > { %478 = vmatmul.f32.gmra.mxu1 %v1962_v33  ;;  %v748_v33 = vld [vmem:[#allocation9 + $0x1b0] sm:$0xff]  ;;  %516 = vst [vmem:[#allocation2 + $0x40] sm:$0xff] %v1759_v21 }
  0x80   : > { %767 = vmatpush.msrb.mxu1 %v748_v33  ;;  %517 = vst [vmem:[#allocation2 + $0x58] sm:$0xff] %v1759_v21  ;;  %979 = vmatpush.msra.mxu0 %v976_v61  ;;  %v1045_v33 = vld [vmem:[#allocation9 + $0x3d0] sm:$0xff] }
  0x81   : > { %518 = vst [vmem:[#allocation2 + $0x70] sm:$0xff] %v1759_v21  ;;  %v964_v61 = vld [vmem:[#allocation9 + $0x310] sm:$0xff] }
  0x82   : > { %768 = vmatpush.msrb.mxu1 %v747_v35  ;;  %519 = vst [vmem:[#allocation2 + $0x88] sm:$0xff] %v1759_v21  ;;  %980 = vmatpush.msra.mxu0 %v975_v0  ;;  %v1122_v0 = vld [vmem:[#allocation9 + $0x470] sm:$0xff] }
  0x83   : > { %520 = vst [vmem:[#allocation2 + $0xa0] sm:$0xff] %v1759_v21 }
  0x84   : > { %769 = vmatpush.msrb.mxu1 %v746_v37  ;;  %521 = vst [vmem:[#allocation2 + $0xb8] sm:$0xff] %v1759_v21  ;;  %981 = vmatpush.msra.mxu0 %v974_v6 }
  0x85   : > { %440 = vmatmul.f32.gmra.mxu0 %v1966_v45  ;;  %522 = vst [vmem:[#allocation2 + $0xd0] sm:$0xff] %v1759_v21 }
  0x86   : > { %770 = vmatpush.msrb.mxu1 %v745_v40  ;;  %982 = vmatpush.msra.mxu0 %v973_v9  ;;  %v1044_v40 = vld [vmem:[#allocation9 + $0x3c8] sm:$0xff]  ;;  %v888_v9 = vld [vmem:[#allocation9 + $0x280] sm:$0xff] }
  0x87   : > { %481 = vmatmul.f32.gmra.mxu1 %v1966_v45  ;;  %v828_v45 = vld [vmem:[#allocation9 + $0x268] sm:$0xff] }
  0x88   : > { %771 = vmatpush.msrb.mxu1 %v744_v41  ;;  %833 = vmatpush.msrb.mxu2 %v828_v45  ;;  %v816_v41 = vld [vmem:[#allocation9 + $0x208] sm:$0xff]  ;;  %v815_v45 = vld [vmem:[#allocation9 + $0x200] sm:$0xff] }
  0x89   : > { %983 = vmatpush.msra.mxu0 %v972_v15  ;;  %v1037_v15 = vld [vmem:[#allocation9 + $0x390] sm:$0xff] }
  0x8a   : > { %772 = vmatpush.msrb.mxu1 %v743_v42  ;;  %834 = vmatpush.msrb.mxu2 %v827_v46  ;;  %v893_v42 = vld [vmem:[#allocation9 + $0x2a8] sm:$0xff] }
  0x8b   : > { %984 = vmatpush.msra.mxu0 %v971_v23  ;;  %v1036_v23 = vld [vmem:[#allocation9 + $0x388] sm:$0xff] }
  0x8c   : > { %773 = vmatpush.msrb.mxu1 %v742_v43  ;;  %835 = vmatpush.msrb.mxu2 %v826_v47  ;;  %v967_v43 = vld [vmem:[#allocation9 + $0x328] sm:$0xff]  ;;  %v892_v47 = vld [vmem:[#allocation9 + $0x2a0] sm:$0xff] }
  0x8d   : > { %443 = vmatmul.f32.gmra.mxu0 %v1971_v60 }
  0x8e   : > { %836 = vmatpush.msrb.mxu2 %v825_v50  ;;  %1051 = vmatpush.msra.mxu1 %v1050_v10  ;;  %v966_v50 = vld [vmem:[#allocation9 + $0x320] sm:$0xff] }
  0x8f   : > { %484 = vmatmul.f32.gmra.mxu1 %v1971_v60  ;;  %v902_v60 = vld [vmem:[#allocation9 + $0x2f0] sm:$0xff]  ;;  %985 = vmatpush.msra.mxu0 %v970_v28  ;;  %v1035_v28 = vld [vmem:[#allocation9 + $0x380] sm:$0xff] }
  0x90   : > { %837 = vmatpush.msrb.mxu2 %v824_v51  ;;  %905 = vmatpush.msrb.mxu3 %v902_v60  ;;  %v890_v60 = vld [vmem:[#allocation9 + $0x290] sm:$0xff] }
  0x91   : > { %1052 = vmatpush.msra.mxu1 %v1049_v13  ;;  %986 = vmatpush.msra.mxu0 %v969_v32  ;;  %v1038_v13 = vld [vmem:[#allocation9 + $0x398] sm:$0xff] }
  0x92   : > { %838 = vmatpush.msrb.mxu2 %v823_v55  ;;  %906 = vmatpush.msrb.mxu3 %v901_v63  ;;  %v891_v55 = vld [vmem:[#allocation9 + $0x298] sm:$0xff]  ;;  %v1040_v63 = vld [vmem:[#allocation9 + $0x3a8] sm:$0xff] }
  0x93   : > { %1053 = vmatpush.msra.mxu1 %v1048_v16  ;;  %987 = vmatpush.msra.mxu0 %v968_v39  ;;  %v1120_v16 = vld [vmem:[#allocation9 + $0x460] sm:$0xff] }
  0x94   : > { %839 = vmatpush.msrb.mxu2 %v822_v56  ;;  %907 = vmatpush.msrb.mxu3 %v900_v4  ;;  %v889_v4 = vld [vmem:[#allocation9 + $0x288] sm:$0xff]  ;;  %v1116_v39 = vld [vmem:[#allocation9 + $0x440] sm:$0xff] }
  0x95   : > { %446 = vmatmul.f32.gmra.mxu0 %v1976_v11  ;;  %1054 = vmatpush.msra.mxu1 %v1047_v24 }
  0x96   : > { %840 = vmatpush.msrb.mxu2 %v821_v5  ;;  %908 = vmatpush.msrb.mxu3 %v899_v8  ;;  %v963_v5 = vld [vmem:[#allocation9 + $0x308] sm:$0xff] }
  0x97   : > { %487 = vmatmul.f32.gmra.mxu1 %v1976_v11  ;;  %988 = vmatpush.msra.mxu0 %v967_v43  ;;  %v1109_v43 = vld [vmem:[#allocation9 + $0x408] sm:$0xff] }
  0x98   : > { %841 = vmatpush.msrb.mxu2 %v820_v7  ;;  %909 = vmatpush.msrb.mxu3 %v898_v12  ;;  %v1039_v7 = vld [vmem:[#allocation9 + $0x3a0] sm:$0xff] }
  0x99   : > { %1055 = vmatpush.msra.mxu1 %v1046_v29  ;;  %989 = vmatpush.msra.mxu0 %v966_v50  ;;  %v962_v12 = vld [vmem:[#allocation9 + $0x300] sm:$0xff]  ;;  %v1119_v29 = vld [vmem:[#allocation9 + $0x458] sm:$0xff] }
  0x9a   : > { %842 = vmatpush.msrb.mxu2 %v819_v22  ;;  %910 = vmatpush.msrb.mxu3 %v897_v18 }
  0x9b   : > { %1056 = vmatpush.msra.mxu1 %v1045_v33  ;;  %990 = vmatpush.msra.mxu0 %v965_v58 }
  0x9c   : > { %911 = vmatpush.msrb.mxu3 %v896_v25  ;;  %843 = vmatpush.msrb.mxu2 %v818_v27 }
  0x9d   : > { %701 = vmatmul.f32.vlgmr.msrb.gmra.mxu0 %v661_v38  ;;  %1057 = vmatpush.msra.mxu1 %v1044_v40 }
  0x9e   : > { %912 = vmatpush.msrb.mxu3 %v895_v30  ;;  %844 = vmatpush.msrb.mxu2 %v817_v34 }
  0x9f   : > { %1058 = vmatpush.msra.mxu1 %v1043_v44  ;;  %991 = vmatpush.msra.mxu0 %v964_v61  ;;  %v1108_v44 = vld [vmem:[#allocation9 + $0x400] sm:$0xff] }
  0xa0   : > { %913 = vmatpush.msrb.mxu3 %v894_v36  ;;  %845 = vmatpush.msrb.mxu2 %v816_v41  ;;  %v1117_v36 = vld [vmem:[#allocation9 + $0x448] sm:$0xff]  ;;  %v1114_v41 = vld [vmem:[#allocation9 + $0x430] sm:$0xff] }
  0xa1   : > { %992 = vmatpush.msra.mxu0 %v963_v5  ;;  %v1107_v5 = vld [vmem:[#allocation2 + $0xe1] sm:$0xff] }
  0xa2   : > { %914 = vmatpush.msrb.mxu3 %v893_v42  ;;  %846 = vmatpush.msrb.mxu2 %v815_v45  ;;  %v1112_v42 = vld [vmem:[#allocation9 + $0x420] sm:$0xff] }
  0xa3   : > { %993 = vmatpush.msra.mxu0 %v962_v12  ;;  %v1205_v12 = vld [vmem:[#allocation11 + $0x60] sm:$0xff] }
  0xa4   : > { %915 = vmatpush.msrb.mxu3 %v892_v47 }
  0xa6   : > { %916 = vmatpush.msrb.mxu3 %v891_v55 }
  0xa8   : > { %917 = vmatpush.msrb.mxu3 %v890_v60 }
  0xaa   : > { %918 = vmatpush.msrb.mxu3 %v889_v4 }
  0xac   : > { %919 = vmatpush.msrb.mxu3 %v888_v9  ;;  %v1206_v9 = vld [vmem:[#allocation11 + $0x68] sm:$0xff] }
  0xda   : > { %v426_v52 = vpop.f32.mrf.mxu0 }
  0xdb   : > { %v427_v53 = vadd.f32 %v426_v52, %v2011_v49  ;;  %v1042_v52 = vld [vmem:[#allocation9 + $0x3b8] sm:$0xff] }
  0xdc   : > { %1059 = vmatpush.msra.mxu1 %v1042_v52 }
  0xdd   : > { %v2014_v54 = vmax.f32 %v427_v53, 0.0 }
  0xdf   : > { %523 = vst [vmem:[#allocation2 + $0x20] sm:$0xff] %v2014_v54  ;;  %598 = vmatmul.f32.gmra.mxu2 %v2014_v54 }
  0xe2   : > { %v429_v59 = vpop.f32.mrf.mxu0 }
  0xe3   : > { %v430_v62 = vadd.f32 %v429_v59, %v2011_v49  ;;  %v1041_v59 = vld [vmem:[#allocation9 + $0x3b0] sm:$0xff] }
  0xe4   : > { %1060 = vmatpush.msra.mxu1 %v1041_v59 }
  0xe5   : > { %v2019_v1 = vmax.f32 %v430_v62, 0.0  ;;  %v1123_v62 = vld [vmem:[#allocation9 + $0x478] sm:$0xff] }
  0xe6   : > { %v532_v2 = vld [vmem:[#allocation2 + $0x1f] sm:$0xff]  ;;  %1124 = vmatpush.msra.mxu2 %v1123_v62  ;;  %1061 = vmatpush.msra.mxu1 %v1040_v63 }
  0xe7   : > { %v2021_v3 = vld [vmem:[#allocation2 + $0x21] sm:$0xff]  ;;  %524 = vst [vmem:[#allocation2 + $0x38] sm:$0xff] %v2019_v1  ;;  %639 = vmatmul.f32.gmra.mxu3 %v532_v2  ;;  %774 = vmatmul.f32.vlgmr.msrb.gmra.mxu1 %v532_v2 }
  0xe8   : > { %704 = vmatmul.f32.gmra.mxu0 %v2021_v3  ;;  %601 = vmatmul.f32.gmra.mxu2 %v2019_v1 }
  0xe9   : > { %1125 = vmatpush.msra.mxu2 %v1122_v0  ;;  %1062 = vmatpush.msra.mxu1 %v1039_v7  ;;  %v1208_v0 = vld [vmem:[#allocation11 + $0x78] sm:$0xff] }
  0xea   : > { %v432_v11 = vpop.f32.mrf.mxu0  ;;  %1213 = vmatpush.msra.mxu3 %v1208_v0 }
  0xeb   : > { %v433_v14 = vadd.f32 %v432_v11, %v2011_v49  ;;  %1063 = vmatpush.msra.mxu1 %v1038_v13  ;;  %v1204_v13 = vld [vmem:[#allocation11 + $0x58] sm:$0xff] }
  0xed   : > { %v2027_v17 = vmax.f32 %v433_v14, 0.0  ;;  %v1121_v14 = vld [vmem:[#allocation9 + $0x468] sm:$0xff]  ;;  %1064 = vmatpush.msra.mxu1 %v1037_v15 }
  0xee   : > { %v2029_v19 = vld [vmem:[#allocation2 + $0x37] sm:$0xff]  ;;  %1126 = vmatpush.msra.mxu2 %v1121_v14 }
  0xef   : > { %v2031_v20 = vld [vmem:[#allocation2 + $0x39] sm:$0xff]  ;;  %525 = vst [vmem:[#allocation2 + $0x50] sm:$0xff] %v2027_v17  ;;  %642 = vmatmul.f32.gmra.mxu3 %v2029_v19  ;;  %777 = vmatmul.f32.gmra.mxu1 %v2029_v19 }
  0xf0   : > { %707 = vmatmul.f32.gmra.mxu0 %v2031_v20  ;;  %604 = vmatmul.f32.gmra.mxu2 %v2027_v17 }
  0xf1   : > { %1127 = vmatpush.msra.mxu2 %v1120_v16  ;;  %1065 = vmatpush.msra.mxu1 %v1036_v23 }
  0xf2   : > { %v435_v26 = vpop.f32.mrf.mxu0 }
  0xf3   : > { %v436_v31 = vadd.f32 %v435_v26, %v2011_v49  ;;  %v1118_v26 = vld [vmem:[#allocation9 + $0x450] sm:$0xff]  ;;  %1066 = vmatpush.msra.mxu1 %v1035_v28  ;;  %1128 = vmatpush.msra.mxu2 %v1119_v29  ;;  %v1201_v28 = vld [vmem:[#allocation11 + $0x40] sm:$0xff]  ;;  %v1200_v29 = vld [vmem:[#allocation11 + $0x38] sm:$0xff] }
  0xf5   : > { %v2039_v35 = vmax.f32 %v436_v31, 0.0  ;;  %1129 = vmatpush.msra.mxu2 %v1118_v26 }
  0xf6   : > { %v2041_v37 = vld [vmem:[#allocation2 + $0x4f] sm:$0xff] }
  0xf7   : > { %v2043_v38 = vld [vmem:[#allocation2 + $0x51] sm:$0xff]  ;;  %526 = vst [vmem:[#allocation2 + $0x68] sm:$0xff] %v2039_v35  ;;  %645 = vmatmul.f32.gmra.mxu3 %v2041_v37  ;;  %780 = vmatmul.f32.gmra.mxu1 %v2041_v37 }
  0xf8   : > { %710 = vmatmul.f32.gmra.mxu0 %v2043_v38  ;;  %607 = vmatmul.f32.gmra.mxu2 %v2039_v35 }
  0xf9   : > { %1130 = vmatpush.msra.mxu2 %v1117_v36 }
  0xfa   : > { %v438_v46 = vpop.f32.mrf.mxu0 }
  0xfb   : > { %v439_v51 = vadd.f32 %v438_v46, %v2011_v49  ;;  %1131 = vmatpush.msra.mxu2 %v1116_v39  ;;  %v961_v46 = vld [vmem:[#allocation2 + $0xdf] sm:$0xff] }
  0xfc   : > { %v2131_v50 = vpop.f32.mrf.mxu2 }
  0xfd   : > { %v2051_v53 = vmax.f32 %v439_v51, 0.0 }
  0xfe   : > { %v2053_v56 = vld [vmem:[#allocation2 + $0x67] sm:$0xff] }
  0xff   : > { %v2055_v57 = vld [vmem:[#allocation2 + $0x69] sm:$0xff]  ;;  %527 = vst [vmem:[#allocation2 + $0x80] sm:$0xff] %v2051_v53  ;;  %648 = vmatmul.f32.gmra.mxu3 %v2053_v56  ;;  %783 = vmatmul.f32.gmra.mxu1 %v2053_v56 }
 0x100   : > { %713 = vmatmul.f32.gmra.mxu0 %v2055_v57  ;;  %610 = vmatmul.f32.gmra.mxu2 %v2051_v53 }
 0x102   : > { %v441_v2 = vpop.f32.mrf.mxu0 }
 0x103   : > { %v442_v6 = vadd.f32 %v441_v2, %v2011_v49 }
 0x105   : > { %v2063_v8 = vmax.f32 %v442_v6, 0.0 }
 0x106   : > { %v2065_v10 = vld [vmem:[#allocation2 + $0x7f] sm:$0xff] }
 0x107   : > { %v2067_v11 = vld [vmem:[#allocation2 + $0x81] sm:$0xff]  ;;  %528 = vst [vmem:[#allocation2 + $0x98] sm:$0xff] %v2063_v8  ;;  %651 = vmatmul.f32.gmra.mxu3 %v2065_v10  ;;  %786 = vmatmul.f32.gmra.mxu1 %v2065_v10 }
 0x108   : > { %716 = vmatmul.f32.gmra.mxu0 %v2067_v11  ;;  %613 = vmatmul.f32.gmra.mxu2 %v2063_v8 }
 0x10a   : > { %v444_v18 = vpop.f32.mrf.mxu0 }
 0x10b   : > { %v445_v22 = vadd.f32 %v444_v18, %v2011_v49  ;;  %v1203_v18 = vld [vmem:[#allocation11 + $0x50] sm:$0xff] }
 0x10d   : > { %v2075_v24 = vmax.f32 %v445_v22, 0.0  ;;  %v1202_v22 = vld [vmem:[#allocation11 + $0x48] sm:$0xff] }
 0x10e   : > { %v2077_v25 = vld [vmem:[#allocation2 + $0x97] sm:$0xff] }
 0x10f   : > { %v2079_v27 = vld [vmem:[#allocation2 + $0x99] sm:$0xff]  ;;  %529 = vst [vmem:[#allocation2 + $0xb0] sm:$0xff] %v2075_v24  ;;  %654 = vmatmul.f32.gmra.mxu3 %v2077_v25  ;;  %789 = vmatmul.f32.gmra.mxu1 %v2077_v25 }
 0x110   : > { %719 = vmatmul.f32.gmra.mxu0 %v2079_v27  ;;  %616 = vmatmul.f32.gmra.mxu2 %v2075_v24 }
 0x112   : > { %v447_v30 = vpop.f32.mrf.mxu0 }
 0x113   : > { %v448_v31 = vadd.f32 %v447_v30, %v2011_v49  ;;  %v1115_v49 = vld [vmem:[#allocation9 + $0x438] sm:$0xff] }
 0x114   : > { %1132 = vmatpush.msra.mxu2 %v1115_v49 }
 0x115   : > { %v2087_v32 = vmax.f32 %v448_v31, 0.0 }
 0x116   : > { %v538_v33 = vld [vmem:[#allocation2 + $0xaf] sm:$0xff]  ;;  %1133 = vmatpush.msra.mxu2 %v1114_v41 }
 0x117   : > { %v2089_v34 = vld [vmem:[#allocation2 + $0xb1] sm:$0xff]  ;;  %530 = vst [vmem:[#allocation2 + $0xc8] sm:$0xff] %v2087_v32  ;;  %657 = vmatmul.f32.gmra.mxu3 %v538_v33  ;;  %792 = vmatmul.f32.gmra.mxu1 %v538_v33 }
 0x118   : > { %722 = vmatmul.f32.gmra.mxu0 %v2089_v34  ;;  %847 = vmatmul.f32.vlgmr.msrb.gmra.mxu2 %v2014_v54  ;;  %v1113_v54 = vld [vmem:[#allocation9 + $0x428] sm:$0xff]  ;;  %v1197_v41 = vld [vmem:[#allocation11 + $0x20] sm:$0xff] }
 0x119   : > { %1134 = vmatpush.msra.mxu2 %v1113_v54  ;;  %v1196_v54 = vld [vmem:[#allocation11 + $0x18] sm:$0xff] }
 0x11b   : > { %1135 = vmatpush.msra.mxu2 %v1112_v42 }
 0x11e   : > { %v741_v40 = vld [vmem:[#allocation2 + $0xc7] sm:$0xff] }
 0x11f   : > { %920 = vmatmul.f32.vlgmr.msrb.gmra.mxu3 %v2021_v3  ;;  %795 = vmatmul.f32.gmra.mxu1 %v741_v40  ;;  %v2101_v3 = vpop.f32.mrf.mxu1  ;;  %v887_v47 = vld [vmem:[#allocation2 + $0xc9] sm:$0xff] }
 0x120   : > { %994 = vmatmul.f32.vlgmr.msra.gmra.mxu0 %v2029_v19  ;;  %850 = vmatmul.f32.gmra.mxu2 %v2019_v1  ;;  %v1111_v19 = vld [vmem:[#allocation9 + $0x418] sm:$0xff] }
 0x121   : > { %1136 = vmatpush.msra.mxu2 %v1111_v19  ;;  %v1195_v19 = vld [vmem:[#allocation11 + $0x10] sm:$0xff] }
 0x127   : > { %923 = vmatmul.f32.gmra.mxu3 %v2031_v20  ;;  %1067 = vmatmul.f32.vlgmr.msra.gmra.mxu1 %v2019_v1  ;;  %v2107_v1 = vpop.f32.mrf.mxu1 }
 0x128   : > { %997 = vmatmul.f32.gmra.mxu0 %v2041_v37  ;;  %853 = vmatmul.f32.gmra.mxu2 %v2027_v17  ;;  %v1110_v37 = vld [vmem:[#allocation9 + $0x410] sm:$0xff] }
 0x129   : > { %1137 = vmatpush.msra.mxu2 %v1110_v37  ;;  %v1194_v37 = vld [vmem:[#allocation11 + $0x8] sm:$0xff] }
 0x12b   : > { %1138 = vmatpush.msra.mxu2 %v1109_v43 }
 0x12d   : > { %1139 = vmatpush.msra.mxu2 %v1108_v44 }
 0x12f   : > { %926 = vmatmul.f32.gmra.mxu3 %v2043_v38  ;;  %1070 = vmatmul.f32.gmra.mxu1 %v2027_v17  ;;  %v2113_v17 = vpop.f32.mrf.mxu1 }
 0x130   : > { %1000 = vmatmul.f32.gmra.mxu0 %v2053_v56  ;;  %856 = vmatmul.f32.gmra.mxu2 %v2039_v35 }
 0x137   : > { %929 = vmatmul.f32.gmra.mxu3 %v2055_v57  ;;  %1073 = vmatmul.f32.gmra.mxu1 %v2039_v35  ;;  %v2120_v45 = vpop.f32.mrf.mxu1 }
 0x138   : > { %1003 = vmatmul.f32.gmra.mxu0 %v2065_v10  ;;  %859 = vmatmul.f32.gmra.mxu2 %v2051_v53 }
 0x13f   : > { %932 = vmatmul.f32.gmra.mxu3 %v2067_v11  ;;  %1076 = vmatmul.f32.gmra.mxu1 %v2051_v53  ;;  %v2127_v35 = vpop.f32.mrf.mxu1 }
 0x140   : > { %1006 = vmatmul.f32.gmra.mxu0 %v2077_v25  ;;  %862 = vmatmul.f32.gmra.mxu2 %v2063_v8 }
 0x147   : > { %935 = vmatmul.f32.gmra.mxu3 %v2079_v27  ;;  %1079 = vmatmul.f32.gmra.mxu1 %v2063_v8  ;;  %v2133_v51 = vpop.f32.mrf.mxu1  ;;  %v1207_v8 = vld [vmem:[#allocation11 + $0x70] sm:$0xff] }
 0x148   : > { %1009 = vmatmul.f32.gmra.mxu0 %v538_v33  ;;  %865 = vmatmul.f32.gmra.mxu2 %v2075_v24  ;;  %v1199_v33 = vld [vmem:[#allocation11 + $0x30] sm:$0xff] }
 0x149   : > { %1214 = vmatpush.msra.mxu3 %v1207_v8 }
 0x14b   : > { %1215 = vmatpush.msra.mxu3 %v1206_v9 }
 0x14d   : > { %1216 = vmatpush.msra.mxu3 %v1205_v12 }
 0x14f   : > { %938 = vmatmul.f32.gmra.mxu3 %v2089_v34  ;;  %1082 = vmatmul.f32.gmra.mxu1 %v2075_v24  ;;  %v2139_v53 = vpop.f32.mrf.mxu1 }
 0x150   : > { %1012 = vmatmul.f32.gmra.mxu0 %v741_v40  ;;  %868 = vmatmul.f32.gmra.mxu2 %v2087_v32 }
 0x151   : > { %1217 = vmatpush.msra.mxu3 %v1204_v13 }
 0x153   : > { %1218 = vmatpush.msra.mxu3 %v1203_v18 }
 0x155   : > { %1219 = vmatpush.msra.mxu3 %v1202_v22 }
 0x157   : > { %941 = vmatmul.f32.gmra.mxu3 %v887_v47  ;;  %1085 = vmatmul.f32.gmra.mxu1 %v2087_v32  ;;  %v2144_v56 = vpop.f32.mrf.mxu1 }
 0x158   : > { %1015 = vmatmul.f32.gmra.mxu0 %v961_v46  ;;  %1140 = vmatmul.f32.vlgmr.msra.gmra.mxu2 %v2031_v20  ;;  %v2147_v20 = vpop.f32.mrf.mxu3  ;;  %v1193_v46 = vld [vmem:[#allocation11] sm:$0xff] }
 0x159   : > { %1220 = vmatpush.msra.mxu3 %v1201_v28 }
 0x15b   : > { %1221 = vmatpush.msra.mxu3 %v1200_v29 }
 0x15d   : > { %1222 = vmatpush.msra.mxu3 %v1199_v33 }
 0x15f   : > { %1088 = vmatmul.f32.gmra.mxu1 %v1759_v21  ;;  %v2152_v21 = vpop.f32.mrf.mxu0 }
 0x160   : > { %1143 = vmatmul.f32.gmra.mxu2 %v2043_v38 }
 0x162   : > { %v2137_v52 = vpop.f32.mrf.mxu2 }
 0x164   : > { %v2154_v38 = vpop.f32.mrf.mxu1 }
 0x168   : > { %1146 = vmatmul.f32.gmra.mxu2 %v2055_v57  ;;  %v2161_v57 = vpop.f32.mrf.mxu0 }
 0x16a   : > { %v2156_v59 = vpop.f32.mrf.mxu3 }
 0x16b   : > { %v2142_v55 = vpop.f32.mrf.mxu2  ;;  %v641_v28 = vadd.f32 %v2156_v59, %v2137_v52  ;;  %v2231_v59 = vld [vmem:[%s2329_s4] ss:$0 sm:$0xff] }
 0x16c   : > { %v2165_v62 = vpop.f32.mrf.mxu1 }
 0x16d   : > { %v727_v33 = vadd.f32 %v2161_v57, %v641_v28 }
 0x170   : > { %1149 = vmatmul.f32.gmra.mxu2 %v2067_v11  ;;  %v2171_v4 = vpop.f32.mrf.mxu0 }
 0x172   : > { %v2167_v63 = vpop.f32.mrf.mxu3 }
 0x173   : > { %v2149_v58 = vpop.f32.mrf.mxu2 }
 0x174   : > { %v2173_v6 = vpop.f32.mrf.mxu1 }
 0x178   : > { %1152 = vmatmul.f32.gmra.mxu2 %v2079_v27  ;;  %v2179_v11 = vpop.f32.mrf.mxu0 }
 0x17a   : > { %v2175_v7 = vpop.f32.mrf.mxu3 }
 0x17b   : > { %v2158_v60 = vpop.f32.mrf.mxu2 }
 0x17c   : > { %v2181_v14 = vpop.f32.mrf.mxu1 }
 0x180   : > { %1155 = vmatmul.f32.gmra.mxu2 %v2089_v34  ;;  %v2185_v23 = vpop.f32.mrf.mxu0  ;;  %v1198_v34 = vld [vmem:[#allocation11 + $0x28] sm:$0xff] }
 0x181   : > { %1223 = vmatpush.msra.mxu3 %v1198_v34 }
 0x182   : > { %v2183_v15 = vpop.f32.mrf.mxu3 }
 0x183   : > { %v2163_v61 = vpop.f32.mrf.mxu2  ;;  %1224 = vmatpush.msra.mxu3 %v1197_v41 }
 0x184   : > { %v2187_v24 = vpop.f32.mrf.mxu1 }
 0x185   : > { %1225 = vmatpush.msra.mxu3 %v1196_v54 }
 0x187   : > { %1226 = vmatpush.msra.mxu3 %v1195_v19  ;;  %v800_v19 = vadd.f32 %v2165_v62, %v727_v33  ;;  %v647_v62 = vadd.f32 %v2175_v7, %v2149_v58 }
 0x188   : > { %1158 = vmatmul.f32.gmra.mxu2 %v887_v47  ;;  %v2191_v26 = vpop.f32.mrf.mxu0 }
 0x189   : > { %1227 = vmatpush.msra.mxu3 %v1194_v37  ;;  %v644_v37 = vadd.f32 %v2167_v63, %v2142_v55 }
 0x18a   : > { %v2189_v25 = vpop.f32.mrf.mxu3 }
 0x18b   : > { %v2169_v2 = vpop.f32.mrf.mxu2  ;;  %1228 = vmatpush.msra.mxu3 %v1193_v46 }
 0x18c   : > { %v2193_v31 = vpop.f32.mrf.mxu1 }
 0x190   : > { %1161 = vmatmul.f32.gmra.mxu2 %v1107_v5  ;;  %v2199_v39 = vpop.f32.mrf.mxu0  ;;  %v638_v5 = vadd.f32 %v2147_v20, %v2131_v50 }
 0x192   : > { %v2195_v32 = vpop.f32.mrf.mxu3  ;;  %v726_v18 = vadd.f32 %v2152_v21, %v638_v5 }
 0x193   : > { %v2177_v10 = vpop.f32.mrf.mxu2 }
 0x194   : > { %v2201_v40 = vpop.f32.mrf.mxu1  ;;  %v799_v22 = vadd.f32 %v2154_v38, %v726_v18  ;;  %v728_v38 = vadd.f32 %v2171_v4, %v644_v37 }
 0x196   : > { %v801_v18 = vadd.f32 %v2173_v6, %v728_v38  ;;  %v650_v6 = vadd.f32 %v2183_v15, %v2158_v60  ;;  %v653_v60 = vadd.f32 %v2189_v25, %v2163_v61  ;;  %v656_v61 = vadd.f32 %v2195_v32, %v2169_v2 }
 0x198   : > { %v2207_v43 = vpop.f32.mrf.mxu0 }
 0x19a   : > { %v2203_v49 = vpop.f32.mrf.mxu3 }
 0x19b   : > { %v848_v16 = vpop.f32.mrf.mxu2  ;;  %v659_v2 = vadd.f32 %v2203_v49, %v2177_v10 }
 0x19c   : > { %v2209_v44 = vpop.f32.mrf.mxu1  ;;  %v872_v29 = vadd.f32 %v848_v16, %v799_v22 }
 0x1a0   : > { %v995_v8 = vpop.f32.mrf.mxu0 }
 0x1a2   : > { %v921_v47 = vpop.f32.mrf.mxu3 }
 0x1a3   : > { %v851_v27 = vpop.f32.mrf.mxu2  ;;  %v945_v34 = vadd.f32 %v921_v47, %v872_v29 }
 0x1a4   : > { %v1068_v9 = vpop.f32.mrf.mxu1  ;;  %v873_v46 = vadd.f32 %v851_v27, %v800_v19 }
 0x1a5   : > { %v1019_v21 = vadd.f32 %v995_v8, %v945_v34 }
 0x1a7   : > { %v1092_v5 = vadd.f32 %v1068_v9, %v1019_v21 }
 0x1a8   : > { %v998_v41 = vpop.f32.mrf.mxu0 }
 0x1aa   : > { %v924_v12 = vpop.f32.mrf.mxu3 }
 0x1ab   : > { %v854_v30 = vpop.f32.mrf.mxu2  ;;  %v946_v52 = vadd.f32 %v924_v12, %v873_v46  ;;  %v729_v12 = vadd.f32 %v2179_v11, %v647_v62  ;;  %v730_v11 = vadd.f32 %v2185_v23, %v650_v6 }
 0x1ac   : > { %v1071_v50 = vpop.f32.mrf.mxu1  ;;  %v874_v8 = vadd.f32 %v854_v30, %v801_v18 }
 0x1ad   : > { %v1020_v55 = vadd.f32 %v998_v41, %v946_v52  ;;  %v802_v34 = vadd.f32 %v2181_v14, %v729_v12  ;;  %v803_v14 = vadd.f32 %v2187_v24, %v730_v11 }
 0x1af   : > { %v1093_v22 = vadd.f32 %v1071_v50, %v1020_v55 }
 0x1b0   : > { %v1001_v47 = vpop.f32.mrf.mxu0 }
 0x1b2   : > { %v927_v20 = vpop.f32.mrf.mxu3 }
 0x1b3   : > { %v2197_v36 = vpop.f32.mrf.mxu2  ;;  %v947_v28 = vadd.f32 %v927_v20, %v874_v8 }
 0x1b4   : > { %v1074_v63 = vpop.f32.mrf.mxu1  ;;  %v875_v19 = vadd.f32 %v2197_v36, %v802_v34 }
 0x1b5   : > { %v1021_v58 = vadd.f32 %v1001_v47, %v947_v28 }
 0x1b7   : > { %v1094_v50 = vadd.f32 %v1074_v63, %v1021_v58 }
 0x1b8   : > { %v1004_v41 = vpop.f32.mrf.mxu0 }
 0x1ba   : > { %v930_v4 = vpop.f32.mrf.mxu3 }
 0x1bb   : > { %v2205_v42 = vpop.f32.mrf.mxu2  ;;  %v948_v20 = vadd.f32 %v930_v4, %v875_v19 }
 0x1bc   : > { %v1077_v30 = vpop.f32.mrf.mxu1  ;;  %v876_v36 = vadd.f32 %v2205_v42, %v803_v14 }
 0x1bd   : > { %v1022_v15 = vadd.f32 %v1004_v41, %v948_v20 }
 0x1bf   : > { %v1095_v23 = vadd.f32 %v1077_v30, %v1022_v15 }
 0x1c2   : > { %v933_v21 = vpop.f32.mrf.mxu3 }
 0x1c3   : > { %v2211_v0 = vpop.f32.mrf.mxu2  ;;  %v949_v47 = vadd.f32 %v933_v21, %v876_v36 }
 0x1c4   : > { %v1080_v18 = vpop.f32.mrf.mxu1 }
 0x1ca   : > { %v936_v62 = vpop.f32.mrf.mxu3 }
 0x1cb   : > { %v2215_v13 = vpop.f32.mrf.mxu2 }
 0x1d3   : > { %v2222_v54 = vpop.f32.mrf.mxu2 }
 0x1db   : > { %v1141_v57 = vpop.f32.mrf.mxu2 }
 0x1dc   : > { %v1165_v16 = vadd.f32 %v1141_v57, %v1092_v5  ;;  %v1007_v57 = vpop.f32.mrf.mxu0 }
 0x1dd   : > { %v1023_v25 = vadd.f32 %v1007_v57, %v949_v47 }
 0x1de   : > { %v1177_v27 = vadd.f32 %v2231_v59, %v1165_v16  ;;  %v731_v16 = vadd.f32 %v2191_v26, %v653_v60  ;;  %v732_v26 = vadd.f32 %v2199_v39, %v656_v61  ;;  %v733_v39 = vadd.f32 %v2207_v43, %v659_v2 }
 0x1df   : > { %v1096_v8 = vadd.f32 %v1080_v18, %v1023_v25 }
 0x1e0   : > { %v1185_v9 = vmax.f32 %v1177_v27, 0.0  ;;  %v804_v24 = vadd.f32 %v2193_v31, %v731_v16  ;;  %v805_v31 = vadd.f32 %v2201_v40, %v732_v26  ;;  %v406_v16 = vperm.slane %v2008_v48, 1 }
 0x1e2   : > { %1229 = vmatmul.f32.vlgmr.msra.gmra.mxu3 %v1185_v9  ;;  %v877_v42 = vadd.f32 %v2211_v0, %v804_v24  ;;  %v878_v0 = vadd.f32 %v2215_v13, %v805_v31  ;;  %v468_v18 = vadd.f32 %v2101_v3, %v406_v16  ;;  %v471_v48 = vadd.f32 %v2107_v1, %v406_v16 }
 0x1e3   : > { %v1144_v29 = vpop.f32.mrf.mxu2  ;;  %v474_v3 = vadd.f32 %v2113_v17, %v406_v16 }
 0x1e4   : > { %v1166_v33 = vadd.f32 %v1144_v29, %v1093_v22  ;;  %v950_v9 = vadd.f32 %v936_v62, %v877_v42  ;;  %v1010_v12 = vpop.f32.mrf.mxu0  ;;  %v1083_v29 = vpop.f32.mrf.mxu1 }
 0x1e6   : > { %v1178_v7 = vadd.f32 %v2231_v59, %v1166_v33  ;;  %v939_v33 = vpop.f32.mrf.mxu3  ;;  %v1024_v32 = vadd.f32 %v1010_v12, %v950_v9  ;;  %v477_v9 = vadd.f32 %v2120_v45, %v406_v16 }
 0x1e8   : > { %v1186_v37 = vmax.f32 %v1178_v7, 0.0  ;;  %v1097_v58 = vadd.f32 %v1083_v29, %v1024_v32  ;;  %v951_v7 = vadd.f32 %v939_v33, %v878_v0  ;;  %v480_v29 = vadd.f32 %v2127_v35, %v406_v16 }
 0x1e9   : > { %v483_v32 = vadd.f32 %v2133_v51, %v406_v16 }
 0x1ea   : > { %1232 = vmatmul.f32.gmra.mxu3 %v1186_v37  ;;  %v806_v37 = vadd.f32 %v2209_v44, %v733_v39  ;;  %v486_v39 = vadd.f32 %v2139_v53, %v406_v16 }
 0x1eb   : > { %v1147_v46 = vpop.f32.mrf.mxu2 }
 0x1ec   : > { %v1167_v38 = vadd.f32 %v1147_v46, %v1094_v50  ;;  %v1013_v41 = vpop.f32.mrf.mxu0  ;;  %v1086_v10 = vpop.f32.mrf.mxu1  ;;  %v879_v11 = vadd.f32 %v2222_v54, %v806_v37 }
 0x1ed   : > { %v1025_v40 = vadd.f32 %v1013_v41, %v951_v7  ;;  %v489_v41 = vadd.f32 %v2144_v56, %v406_v16 }
 0x1ee   : > { %v1179_v5 = vadd.f32 %v2231_v59, %v1167_v38  ;;  %v942_v49 = vpop.f32.mrf.mxu3 }
 0x1ef   : > { %v1098_v13 = vadd.f32 %v1086_v10, %v1025_v40  ;;  %v952_v20 = vadd.f32 %v942_v49, %v879_v11 }
 0x1f0   : > { %v1187_v52 = vmax.f32 %v1179_v5, 0.0 }
 0x1f2   : > { %1235 = vmatmul.f32.gmra.mxu3 %v1187_v52 }
 0x1f3   : > { %v1150_v55 = vpop.f32.mrf.mxu2 }
 0x1f4   : > { %v1168_v63 = vadd.f32 %v1150_v55, %v1095_v23  ;;  %v1016_v43 = vpop.f32.mrf.mxu0  ;;  %v1089_v15 = vpop.f32.mrf.mxu1  ;;  %v1524_v23 = vld [vmem:[%s2331_s6] ss:$0 sm:$0xff] }
 0x1f5   : > { %v1026_v14 = vadd.f32 %v1016_v43, %v952_v20 }
 0x1f6   : > { %v1180_v27 = vadd.f32 %v2231_v59, %v1168_v63 }
 0x1f7   : > { %v1099_v5 = vadd.f32 %v1089_v15, %v1026_v14 }
 0x1f8   : > { %v1188_v4 = vmax.f32 %v1180_v27, 0.0 }
 0x1fa   : > { %1238 = vmatmul.f32.gmra.mxu3 %v1188_v4 }
 0x1fb   : > { %v1153_v22 = vpop.f32.mrf.mxu2 }
 0x1fc   : > { %v1169_v28 = vadd.f32 %v1153_v22, %v1096_v8 }
 0x1fe   : > { %v1181_v34 = vadd.f32 %v2231_v59, %v1169_v28 }
 0x200   : > { %v1189_v6 = vmax.f32 %v1181_v34, 0.0 }
 0x202   : > { %1241 = vmatmul.f32.gmra.mxu3 %v1189_v6 }
 0x203   : > { %v1156_v19 = vpop.f32.mrf.mxu2 }
 0x204   : > { %v1170_v30 = vadd.f32 %v1156_v19, %v1097_v58 }
 0x206   : > { %v1182_v21 = vadd.f32 %v2231_v59, %v1170_v30 }
 0x208   : > { %v1190_v50 = vmax.f32 %v1182_v21, 0.0 }
 0x20a   : > { %1244 = vmatmul.f32.gmra.mxu3 %v1190_v50 }
 0x20b   : > { %v1159_v46 = vpop.f32.mrf.mxu2 }
 0x20c   : > { %v1171_v38 = vadd.f32 %v1159_v46, %v1098_v13 }
 0x20e   : > { %v1183_v60 = vadd.f32 %v2231_v59, %v1171_v38 }
 0x210   : > { %v1191_v44 = vmax.f32 %v1183_v60, 0.0 }
 0x212   : > { %1247 = vmatmul.f32.gmra.mxu3 %v1191_v44 }
 0x213   : > { %v1162_v36 = vpop.f32.mrf.mxu2 }
 0x214   : > { %v1172_v52 = vadd.f32 %v1162_v36, %v1099_v5 }
 0x216   : > { %v1184_v57 = vadd.f32 %v2231_v59, %v1172_v52 }
 0x218   : > { %v1192_v54 = vmax.f32 %v1184_v57, 0.0 }
 0x21a   : > { %1250 = vmatmul.f32.gmra.mxu3 %v1192_v54 }
 0x265   : > { %v1230_v47 = vpop.f32.mrf.mxu3 }
 0x266   : > { %v1231_v62 = vadd.f32 %v1524_v23, %v1230_v47 }
 0x268   : > { %v1254_v55 = vadd.f32 %v1231_v62, %v468_v18 }
 0x26a   : > { %v1262_v63 = vmax.f32 %v1254_v55, 0.0 }
 0x26c   : > { %1270 = vst [vmem:[%s2274_s9] sm:$0xff] %v1262_v63 }
 0x26d   : > { %v1233_v59 = vpop.f32.mrf.mxu3 }
 0x26e   : > { %v1234_v24 = vadd.f32 %v1524_v23, %v1233_v59 }
 0x270   : > { %v1255_v61 = vadd.f32 %v1234_v24, %v471_v48 }
 0x272   : > { %v1263_v25 = vmax.f32 %v1255_v61, 0.0 }
 0x274   : > { %1271 = vst [vmem:[%s2274_s9 + $0x8] sm:$0xff] %v1263_v25 }
 0x275   : > { %v1236_v27 = vpop.f32.mrf.mxu3 }
 0x276   : > { %v1237_v42 = vadd.f32 %v1524_v23, %v1236_v27 }
 0x278   : > { %v1256_v4 = vadd.f32 %v1237_v42, %v474_v3 }
 0x27a   : > { %v1264_v26 = vmax.f32 %v1256_v4, 0.0 }
 0x27c   : > { %1272 = vst [vmem:[%s2274_s9 + $0x10] sm:$0xff] %v1264_v26 }
 0x27d   : > { %v1239_v8 = vpop.f32.mrf.mxu3 }
 0x27e   : > { %v1240_v12 = vadd.f32 %v1524_v23, %v1239_v8 }
 0x280   : > { %v1257_v22 = vadd.f32 %v1240_v12, %v477_v9 }
 0x282   : > { %v1265_v1 = vmax.f32 %v1257_v22, 0.0 }
 0x284   : > { %1273 = vst [vmem:[%s2274_s9 + $0x18] sm:$0xff] %v1265_v1 }
 0x285   : > { %v1242_v28 = vpop.f32.mrf.mxu3 }
 0x286   : > { %v1243_v33 = vadd.f32 %v1524_v23, %v1242_v28 }
 0x288   : > { %v1258_v31 = vadd.f32 %v1243_v33, %v480_v29 }
 0x28a   : > { %v1266_v17 = vmax.f32 %v1258_v31, 0.0 }
 0x28c   : > { %1274 = vst [vmem:[%s2274_s9 + $0x20] sm:$0xff] %v1266_v17 }
 0x28d   : > { %v1245_v2 = vpop.f32.mrf.mxu3 }
 0x28e   : > { %v1246_v34 = vadd.f32 %v1524_v23, %v1245_v2 }
 0x290   : > { %v1259_v45 = vadd.f32 %v1246_v34, %v483_v32 }
 0x292   : > { %v1267_v0 = vmax.f32 %v1259_v45, 0.0 }
 0x294   : > { %1275 = vst [vmem:[%s2274_s9 + $0x28] sm:$0xff] %v1267_v0 }
 0x295   : > { %v1248_v6 = vpop.f32.mrf.mxu3 }
 0x296   : > { %v1249_v58 = vadd.f32 %v1524_v23, %v1248_v6 }
 0x298   : > { %v1260_v35 = vadd.f32 %v1249_v58, %v486_v39 }
 0x29a   : > { %v1268_v7 = vmax.f32 %v1260_v35, 0.0 }
 0x29c   : > { %1276 = vst [vmem:[%s2274_s9 + $0x30] sm:$0xff] %v1268_v7 }
 0x29d   : > { %v1251_v51 = vpop.f32.mrf.mxu3 }
 0x29e   : > { %v1252_v19 = vadd.f32 %v1524_v23, %v1251_v51 }
 0x2a0   : > { %v1261_v53 = vadd.f32 %v1252_v19, %v489_v41 }
 0x2a2   : > { %v1269_v30 = vmax.f32 %v1261_v53, 0.0 }
 0x2a4   : > { %1277 = vst [vmem:[%s2274_s9 + $0x38] sm:$0xff] %v1269_v30 }
 0x2a5   : > { %1702 = shalt.err (!%p1699_p10)
}
 0x2a6   : > { %s1760_s14 = smov 128   ;;  %s1761_s9 = smov 8  }
 0x2a7   : > { %1447 = dma.vmem_to_hbm [thread:$0]  (%p1892_p3), %s1292_s15, 1024, %s1294_s18, %s1279_s1, %s1760_s14, %s1760_s14, %s1761_s9  }
 0x2a8 PF: > { %s1308_s22 = sand.u32 1, %s1737_s24   ;;  %p2345_p12 = scmp.ge.s32.totalorder %s1749_s27, 2 }
 0x2a9   : > { %s1309_s16 = scalar_lea.sflag [#allocation5], %s1308_s22 }
 0x2aa   : > { %p1467_p13 = pnand %p2345_p12, %p1837_p6 }
 0x2ac   : > { %p1468_p0 = pneg %p1467_p13 }
 0x2ae   : > { %1732 = dma.done.wait (%p1468_p0), %s1309_s16, 1024  }
 0x2af   : > { %1734 = vsyncadd (%p1468_p0), %s1309_s16, 4294966272  ;;  %p22_p5 = scmp.ge.s32.totalorder %s1882_s21, 4   ;;  %s2346_s24 = smov %s1741_s25 }
 0x2b0   : > { %s2347_s25 = smov %s1745_s26  ;;  %s2348_s26 = smov %s1898_s11 }
 0x2b1   : > { %s2349_s27 = smov %s1882_s21  ;;  %24 = sbr.rel (!%p22_p5) target bundleno = 9 (0x9), region = 112 }
 0x2b6   :  { %1315 = vsyncpa [#allocation4], 1 }
 0x2b7   :  { %1317 = vsyncpa [#allocation4 + $0x1], 1 }
 0x2b8   :  { %1318 = vsyncpa [#allocation7], 1 }
 0x2b9   :  { %1319 = vsyncpa [#allocation10], 1 }
 0x2ba   :  { %1320 = vsyncpa [#allocation5], 1 }
 0x2bb   :  { %1322 = vsyncpa [#allocation5 + $0x1], 1 }

</bundles_post_ra>
